<compile_context>
chip_gen: v7x
topology: tpu7x:2x2x1
jax: 0.10.0
libtpu: 0.0.40
codegen_flags: <defaults>
</compile_context>

<pallas_src>
import functools

import jax
import jax.numpy as jnp
from jax import lax
from jax.experimental import pallas as pl
from jax.experimental.pallas import tpu as pltpu


def _round_up(x, m):
    return (x + m - 1) // m * m


def _pick_tn(n):
    """Images per grid step: big enough to amortize step overhead, but keep
    the grid length >= 2 so v7x's two TensorCores both get work."""
    if n <= 1:
        return 1
    return min(8, max(1, (n + 1) // 2))


def _eval_kernel(x_ref, w_ref, b_ref, pw_ref, o_ref, *, tn, m_rows, wp, k):
    """One batch-tile of TN images per grid step.

    x_ref : (TN, Lp, Cin)        zero-padded, spatially-flattened images
    w_ref : (K*K*Cin, COUT_PAD)  folded conv weights (tap-major rows)
    b_ref : (1, COUT_PAD)        f32 bias
    pw_ref: (TN, TN*M)           f32 block-diagonal masked pooling weights
    o_ref : (1, TN, COUT_PAD)    f32 pooled features
    """
    # Fold the 3x3 taps of every image into one (TN*M, K*K*Cin) lhs:
    # tap (dy, dx) of output row m is just row m + dy*Wp + dx of the flat image.
    lhs_parts = []
    for t in range(tn):
        taps = [x_ref[t, pl.ds(dy * wp + dx, m_rows), :]
                for dy in range(k) for dx in range(k)]
        lhs_parts.append(jnp.concatenate(taps, axis=-1))        # (M, K*K*Cin)
    lhs = jnp.concatenate(lhs_parts, axis=0)                    # (TN*M, K*K*Cin)

    # Single deep MXU contraction (depth K*K*Cin) with f32 accumulation.
    acc = jnp.dot(lhs, w_ref[...], preferred_element_type=jnp.float32)
    act = jnp.maximum(acc + b_ref[...], 0.0)                    # bias + ReLU (VPU)

    # Masked global-average-pool as an MXU matmul: the block-diagonal pooling
    # matrix selects each image's rows, zeroes the garbage columns of the
    # strided grid, and carries the constant 1/(H*W).  One lane-dense store.
    o_ref[0] = jnp.dot(pw_ref[...], act,
                       preferred_element_type=jnp.float32).astype(o_ref.dtype)


def eval_model_features(x_nchw, conv_w, conv_b, *, compute_dtype=jnp.float32,
                        images_per_step=None):
    """EvalModel.forward: conv3x3(pad=1) -> ReLU -> global avg pool -> flatten.

    x_nchw : (N, Cin, H, W) float32
    conv_w : (Cout, Cin, 3, 3) float32 (PyTorch OIHW layout)
    conv_b : (Cout,) float32
    returns: (N, Cout) float32

    compute_dtype=bf16 halves HBM bytes of the dominant image/weight stream;
    recommended on v5e, v6e and v7x (accumulation stays f32).
    """
    N, Cin, H, W = x_nchw.shape
    Cout, Cin_w, K, K2 = conv_w.shape
    assert K == 3 and K2 == 3 and Cin_w == Cin

    Wp = W + 2                        # padded row width
    M = H * Wp                        # rows of the strided conv output grid
    Lp = (H + 3) * Wp                 # flat rows incl. one extra zero row of slack
    KKC = K * K * Cin                 # folded contraction depth
    COUT_PAD = _round_up(max(Cout, 128), 128)

    TN = images_per_step if images_per_step is not None else _pick_tn(N)
    G = -(-N // TN)                   # grid length
    N_pad = G * TN

    # ---- glue (fused into the same jit; no im2col materialization) ----
    # Cast first (halves transpose/pad traffic for bf16), single pad, single reshape.
    x_nhwc = jnp.transpose(x_nchw.astype(compute_dtype), (0, 2, 3, 1))
    xp = jnp.pad(x_nhwc, ((0, N_pad - N), (1, 2), (1, 1), (0, 0)))   # SAME pad + slack row
    xflat = xp.reshape(N_pad, Lp, Cin)

    # (Cout, Cin, K, K) -> (K*K*Cin, Cout_pad); row index = (dy*K + dx)*Cin + c.
    w2 = jnp.transpose(conv_w, (2, 3, 1, 0)).reshape(KKC, Cout)
    w2 = jnp.pad(w2, ((0, 0), (0, COUT_PAD - Cout))).astype(compute_dtype)
    b = jnp.pad(conv_b, (0, COUT_PAD - Cout)).reshape(1, COUT_PAD).astype(jnp.float32)

    # Block-diagonal pooling matrix: pw[t, t*M + m] = 1/(H*W) on the W valid
    # columns of each Wp-wide output row, 0 on the 2 garbage columns.
    col = jnp.arange(M, dtype=jnp.int32) % Wp
    valid = jnp.where(col < W, 1.0 / (H * W), 0.0).astype(jnp.float32)          # (M,)
    pw = (jnp.eye(TN, dtype=jnp.float32)[:, :, None]
          * valid[None, None, :]).reshape(TN, TN * M)

    kernel = functools.partial(_eval_kernel, tn=TN, m_rows=M, wp=Wp, k=K)

    flops = 2 * N_pad * M * COUT_PAD * (KKC + TN)
    bytes_accessed = (xflat.size * xflat.dtype.itemsize
                      + w2.size * w2.dtype.itemsize
                      + b.size * 4 + pw.size * 4
                      + N_pad * COUT_PAD * 4)

    out3 = pl.pallas_call(
        kernel,
        out_shape=jax.ShapeDtypeStruct((G, TN, COUT_PAD), jnp.float32),
        grid_spec=pltpu.PrefetchScalarGridSpec(
            num_scalar_prefetch=0,
            grid=(G,),
            in_specs=[
                pl.BlockSpec((TN, Lp, Cin), lambda n: (n, 0, 0)),
                pl.BlockSpec((KKC, COUT_PAD), lambda n: (0, 0)),
                pl.BlockSpec((1, COUT_PAD), lambda n: (0, 0)),
                pl.BlockSpec((TN, TN * M), lambda n: (0, 0)),
            ],
            out_specs=pl.BlockSpec((1, TN, COUT_PAD), lambda n: (n, 0, 0)),
        ),
        compiler_params=pltpu.CompilerParams(
            dimension_semantics=("parallel",),       # split batch tiles across TCs (v7x)
            vmem_limit_bytes=32 * 1024 * 1024,       # safe on v7x's 64 MiB VMEM
        ),
        cost_estimate=pl.CostEstimate(
            flops=flops, transcendentals=0, bytes_accessed=bytes_accessed),
    )(xflat, w2, b, pw)

    return out3.reshape(N_pad, COUT_PAD)[:N, :Cout]


def _reference(x_nchw, conv_w, conv_b):
    # Pure-JAX reference matching PyTorch semantics exactly.
    conv = lax.conv_general_dilated(
        x_nchw, conv_w, window_strides=(1, 1), padding="SAME",
        dimension_numbers=("NCHW", "OIHW", "NCHW"),
    ) + conv_b[None, :, None, None]
    act = jnp.maximum(conv, 0.0)
    return jnp.mean(act, axis=(2, 3))     # AdaptiveAvgPool2d(1) + Flatten


if __name__ == "__main__":
    key = jax.random.PRNGKey(0)
    k_x, k_w, k_b = jax.random.split(key, 3)

    N, Cin, H, W = 2, 4, 16, 16
    Cout, K = 8, 3

    x = jax.random.normal(k_x, (N, Cin, H, W), dtype=jnp.float32)
    conv_w = jax.random.normal(k_w, (Cout, Cin, K, K), dtype=jnp.float32) * 0.1
    conv_b = jax.random.normal(k_b, (Cout,), dtype=jnp.float32) * 0.1

    feat_fn = jax.jit(eval_model_features,
                      static_argnames=("compute_dtype", "images_per_step"))
    ref = _reference(x, conv_w, conv_b)

    # f32 compute path (TN=1, grid=2: both v7x TensorCores get a step).
    feats = jax.block_until_ready(feat_fn(x, conv_w, conv_b))
    assert feats.shape == (N, Cout)
    assert jnp.allclose(feats, ref, atol=5e-4, rtol=5e-4), "f32 mismatch vs reference"

    # bf16 input/weight stream (recommended on v5e/v6e/v7x: halves HBM bytes
    # of the dominant stream; accumulation stays f32), looser tolerance.
    feats_bf16 = jax.block_until_ready(
        feat_fn(x, conv_w, conv_b, compute_dtype=jnp.bfloat16))
    assert jnp.allclose(feats_bf16, ref, atol=3e-2, rtol=3e-2), "bf16 mismatch vs reference"

    # Exercise the multi-image batch tile (N=16 -> TN=8, grid=2).
    x2 = jax.random.normal(k_x, (16, Cin, H, W), dtype=jnp.float32)
    feats2 = jax.block_until_ready(feat_fn(x2, conv_w, conv_b))
    ref2 = _reference(x2, conv_w, conv_b)
    assert feats2.shape == (16, Cout)
    assert jnp.allclose(feats2, ref2, atol=5e-4, rtol=5e-4), "batched f32 mismatch vs reference"

    print("KERNEL_OK")
</pallas_src>

<mosaic_0001>
module attributes {stable_mosaic.version = 11 : i64} {
  func.func @_eval_kernel(%arg0: i32, %arg1: memref<1x342x4xf32, #tpu.memory_space<vmem>>, %arg2: memref<36x128xf32, #tpu.memory_space<vmem>>, %arg3: memref<1x128xf32, #tpu.memory_space<vmem>>, %arg4: memref<1x288xf32, #tpu.memory_space<vmem>>, %arg5: memref<1x1x128xf32, #tpu.memory_space<vmem>>) attributes {dimension_semantics = [#tpu.dimension_semantics<parallel>], iteration_bounds = array<i64: 2>, scalar_prefetch = 0 : i64, scratch_operands = 0 : i64, tpu.core_type = #tpu.core_type<tc>, window_params = [{transform_indices = @transform_0, window_bounds = array<i64: 1, 342, 4>}, {pipeline_mode = #tpu.pipeline_mode<synchronous>, transform_indices = @transform_1, window_bounds = array<i64: 36, 128>}, {pipeline_mode = #tpu.pipeline_mode<synchronous>, transform_indices = @transform_2, window_bounds = array<i64: 1, 128>}, {pipeline_mode = #tpu.pipeline_mode<synchronous>, transform_indices = @transform_3, window_bounds = array<i64: 1, 288>}, {transform_indices = @transform_4, window_bounds = array<i64: 1, 1, 128>}]} {
    %c0 = arith.constant 0 : index
    %c0_0 = arith.constant 0 : index
    %c0_1 = arith.constant 0 : index
    %0 = vector.load %arg1[%c0, %c0_0, %c0_1] : memref<1x342x4xf32, #tpu.memory_space<vmem>>, vector<1x288x4xf32>
    %1 = vector.shape_cast %0 : vector<1x288x4xf32> to vector<288x4xf32>
    %c0_2 = arith.constant 0 : index
    %c1 = arith.constant 1 : index
    %c0_3 = arith.constant 0 : index
    %2 = vector.load %arg1[%c0_2, %c1, %c0_3] : memref<1x342x4xf32, #tpu.memory_space<vmem>>, vector<1x288x4xf32>
    %3 = vector.shape_cast %2 : vector<1x288x4xf32> to vector<288x4xf32>
    %c0_4 = arith.constant 0 : index
    %c2 = arith.constant 2 : index
    %c0_5 = arith.constant 0 : index
    %4 = vector.load %arg1[%c0_4, %c2, %c0_5] : memref<1x342x4xf32, #tpu.memory_space<vmem>>, vector<1x288x4xf32>
    %5 = vector.shape_cast %4 : vector<1x288x4xf32> to vector<288x4xf32>
    %c0_6 = arith.constant 0 : index
    %c18 = arith.constant 18 : index
    %c0_7 = arith.constant 0 : index
    %6 = vector.load %arg1[%c0_6, %c18, %c0_7] : memref<1x342x4xf32, #tpu.memory_space<vmem>>, vector<1x288x4xf32>
    %7 = vector.shape_cast %6 : vector<1x288x4xf32> to vector<288x4xf32>
    %c0_8 = arith.constant 0 : index
    %c19 = arith.constant 19 : index
    %c0_9 = arith.constant 0 : index
    %8 = vector.load %arg1[%c0_8, %c19, %c0_9] : memref<1x342x4xf32, #tpu.memory_space<vmem>>, vector<1x288x4xf32>
    %9 = vector.shape_cast %8 : vector<1x288x4xf32> to vector<288x4xf32>
    %c0_10 = arith.constant 0 : index
    %c20 = arith.constant 20 : index
    %c0_11 = arith.constant 0 : index
    %10 = vector.load %arg1[%c0_10, %c20, %c0_11] : memref<1x342x4xf32, #tpu.memory_space<vmem>>, vector<1x288x4xf32>
    %11 = vector.shape_cast %10 : vector<1x288x4xf32> to vector<288x4xf32>
    %c0_12 = arith.constant 0 : index
    %c36 = arith.constant 36 : index
    %c0_13 = arith.constant 0 : index
    %12 = vector.load %arg1[%c0_12, %c36, %c0_13] : memref<1x342x4xf32, #tpu.memory_space<vmem>>, vector<1x288x4xf32>
    %13 = vector.shape_cast %12 : vector<1x288x4xf32> to vector<288x4xf32>
    %c0_14 = arith.constant 0 : index
    %c37 = arith.constant 37 : index
    %c0_15 = arith.constant 0 : index
    %14 = vector.load %arg1[%c0_14, %c37, %c0_15] : memref<1x342x4xf32, #tpu.memory_space<vmem>>, vector<1x288x4xf32>
    %15 = vector.shape_cast %14 : vector<1x288x4xf32> to vector<288x4xf32>
    %c0_16 = arith.constant 0 : index
    %c38 = arith.constant 38 : index
    %c0_17 = arith.constant 0 : index
    %16 = vector.load %arg1[%c0_16, %c38, %c0_17] : memref<1x342x4xf32, #tpu.memory_space<vmem>>, vector<1x288x4xf32>
    %17 = vector.shape_cast %16 : vector<1x288x4xf32> to vector<288x4xf32>
    %18 = tpu.concatenate %1, %3, %5, %7, %9, %11, %13, %15, %17 in 1 : vector<288x4xf32>, vector<288x4xf32>, vector<288x4xf32>, vector<288x4xf32>, vector<288x4xf32>, vector<288x4xf32>, vector<288x4xf32>, vector<288x4xf32>, vector<288x4xf32> -> vector<288x36xf32>
    %c0_18 = arith.constant 0 : index
    %c0_19 = arith.constant 0 : index
    %19 = vector.load %arg2[%c0_18, %c0_19] : memref<36x128xf32, #tpu.memory_space<vmem>>, vector<36x128xf32>
    %cst = arith.constant dense<0.000000e+00> : vector<288x128xf32>
    %20 = tpu.matmul %18, %19, %cst {dimension_numbers = #tpu.dot_dimension_numbers<[1], [0], [0], [1], [0, 0, 1, 1], [], []>} : vector<288x36xf32>, vector<36x128xf32>, vector<288x128xf32> -> vector<288x128xf32>
    %c0_20 = arith.constant 0 : index
    %c0_21 = arith.constant 0 : index
    %21 = vector.load %arg3[%c0_20, %c0_21] : memref<1x128xf32, #tpu.memory_space<vmem>>, vector<1x128xf32>
    %22 = vector.broadcast %21 : vector<1x128xf32> to vector<288x128xf32>
    %23 = arith.addf %20, %22 : vector<288x128xf32>
    %cst_22 = arith.constant 0.000000e+00 : f32
    %24 = vector.broadcast %cst_22 : f32 to vector<288x128xf32>
    %25 = arith.maximumf %23, %24 : vector<288x128xf32>
    %c0_23 = arith.constant 0 : index
    %c0_24 = arith.constant 0 : index
    %26 = vector.load %arg4[%c0_23, %c0_24] : memref<1x288xf32, #tpu.memory_space<vmem>>, vector<1x288xf32>
    %cst_25 = arith.constant dense<0.000000e+00> : vector<1x128xf32>
    %27 = tpu.matmul %26, %25, %cst_25 {dimension_numbers = #tpu.dot_dimension_numbers<[1], [0], [0], [1], [0, 0, 1, 1], [], []>} : vector<1x288xf32>, vector<288x128xf32>, vector<1x128xf32> -> vector<1x128xf32>
    %c0_26 = arith.constant 0 : index
    %c0_27 = arith.constant 0 : index
    %c0_28 = arith.constant 0 : index
    %28 = vector.load %arg5[%c0_26, %c0_27, %c0_28] : memref<1x1x128xf32, #tpu.memory_space<vmem>>, vector<1x1x128xf32>
    %29 = vector.shape_cast %28 : vector<1x1x128xf32> to vector<1x128xf32>
    %30 = vector.shape_cast %27 : vector<1x128xf32> to vector<1x1x128xf32>
    tpu.vector_store %arg5[%c0_26, %c0_27, %c0_28], %30 {strides = array<i32>} : memref<1x1x128xf32, #tpu.memory_space<vmem>>, vector<1x1x128xf32>,
    return
  }
  func.func @transform_0(%arg0: i32) -> (i32, i32, i32) {
    %c0_i32 = arith.constant 0 : i32
    %c0_i32_0 = arith.constant 0 : i32
    %c0_i32_1 = arith.constant 0 : i32
    return %arg0, %c0_i32, %c0_i32_0 : i32, i32, i32
  }
  func.func @transform_1(%arg0: i32) -> (i32, i32) {
    %c0_i32 = arith.constant 0 : i32
    %c0_i32_0 = arith.constant 0 : i32
    %c0_i32_1 = arith.constant 0 : i32
    return %c0_i32, %c0_i32_0 : i32, i32
  }
  func.func @transform_2(%arg0: i32) -> (i32, i32) {
    %c0_i32 = arith.constant 0 : i32
    %c0_i32_0 = arith.constant 0 : i32
    %c0_i32_1 = arith.constant 0 : i32
    return %c0_i32, %c0_i32_0 : i32, i32
  }
  func.func @transform_3(%arg0: i32) -> (i32, i32) {
    %c0_i32 = arith.constant 0 : i32
    %c0_i32_0 = arith.constant 0 : i32
    %c0_i32_1 = arith.constant 0 : i32
    return %c0_i32, %c0_i32_0 : i32, i32
  }
  func.func @transform_4(%arg0: i32) -> (i32, i32, i32) {
    %c0_i32 = arith.constant 0 : i32
    %c0_i32_0 = arith.constant 0 : i32
    %c0_i32_1 = arith.constant 0 : i32
    return %arg0, %c0_i32, %c0_i32_0 : i32, i32, i32
  }
}

</mosaic_0001>

<bundles_post_ra>
// kernel: eval_model_features.1
= control target key start
LH: loop header
LB: loop body
LE: loop exit
PB: predicated region body
PF: predicated region fallthrough
CT: control target
= control target key end

     0   :  { %9 = vsyncpa [#allocation3], 0  ;;  %s4292_s0 = inlined_call_operand.vmem [shape: f32[2,342,4], index: 0, kind: input, shape index: {}]   ;;  %s4293_s1 = inlined_call_operand.vmem [shape: f32[36,128], index: 1, kind: input, shape index: {}]   ;;  %s4294_s2 = inlined_call_operand.vmem [shape: f32[1,128], index: 2, kind: input, shape index: {}]   ;;  %s4295_s3 = inlined_call_operand.vmem [shape: f32[1,288], index: 3, kind: input, shape index: {}]   ;;  %s4296_s4 = inlined_call_operand.hbm [shape: f32[2,1,128], index: 4, kind: output, shape index: {}]  }
   0x1   :  { %11 = vsyncpa [#allocation3 + $0x1], 0  ;;  %s2866_s15 = smov 0   ;;  %s2868_s16 = smov 0  }
   0x2   :  { %s2870_s17 = smov 0   ;;  %s2872_s18 = smov 0  }
   0x3 LB: > { %s2887_s19 = sadd.s32 4294967295, %s2827_s18   ;;  %s2464_s20 = sadd.s32 4294967294, %s2827_s18   ;;  %s2827_s18 = sphi %s2872_s18, %s4302_s18   ;;  %s2823_s17 = sphi %s2870_s17, %s4301_s17   ;;  %s2819_s16 = sphi %s2868_s16, %s4300_s16   ;;  %s2815_s15 = sphi %s2866_s15, %s4299_s15  }
   0x4   : > { %s2891_s21 = sadd.s32 1, %s2827_s18   ;;  %s113_s22 = sadd.s32 1, %s2823_s17 }
   0x5   : > { %s110_s23 = ssub.s32 %s2827_s18, %s2891_s21  ;;  %p123_p0 = scmp.ne.s32.totalorder %s2823_s17, %s2819_s16 }
   0x6   : > { %p111_p1 = scmp.eq.s32.totalorder %s110_s23, 0  ;;  %p124_p2 = scmp.eq.s32.totalorder %s2887_s19, 1 }
   0x7   : > { %p129_p3 = scmp.ne.s32.totalorder %s2819_s16, %s2815_s15  ;;  %p130_p4 = scmp.eq.s32.totalorder %s2464_s20, 1 }
   0x8   : > { %s2902_s24 = scalar_select %p111_p1, %s2823_s17, %s113_s22  }
   0x9   : > { %p2904_p5 = por %p124_p2, %p123_p0  ;;  %p2908_p6 = por %p130_p4, %p129_p3 }
   0xa   : > { %p2467_p7 = scmp.ge.s32.totalorder %s2827_s18, 1  ;;  %p165_p8 = scmp.lt.s32.totalorder %s2827_s18, 3 }
   0xc   : > { %p166_p9 = pnand %p2467_p7, %p165_p8 }
   0xd   : > { %p190_p10 = scmp.lt.s32.totalorder (!%p166_p9), %s2887_s19, 1  ;;  %s2829_s6 = smov (!%p166_p9), 8   ;;  %v1831_v13 = vld [vmem:[%s4293_s1] sm:$0xff] (!%p166_p9)  ;;  %v1832_v14 = vld [vmem:[%s4293_s1 + $0x8] sm:$0xff] (!%p166_p9)  ;;  %v1833_v17 = vld [vmem:[%s4293_s1 + $0x10] sm:$0xff] (!%p166_p9)  ;;  %vm1952_vm0 = vcmask (!%p166_p9), 1043456  }
   0xe   : > { %169 = sbr.rel (%p166_p9) target bundleno = 1167 (0x48f), region = 36  ;;  %s2830_s7 = smov (!%p166_p9), 4   ;;  %v2667_v15 = vpack.c.bf16 (!%p166_p9), %v1832_v14, %v1831_v13  ;;  %v1834_v18 = vld [vmem:[%s4293_s1 + $0x18] sm:$0xff] (!%p166_p9)  ;;  %v1835_v22 = vld [vmem:[%s4293_s1 + $0x20] sm:$0xf] (!%p166_p9)  ;;  %vm1535_vm1 = vcmask (!%p166_p9), 31744  }
   0xf   : > { %s2831_s8 = smov (!%p166_p9), 12   ;;  %s2832_s9 = smov (!%p166_p9), 16   ;;  %v2671_v21 = vpack.c.bf16 (!%p166_p9), %v1834_v18, %v1833_v17  ;;  %vm1572_vm2 = vcmask (!%p166_p9), 64512   ;;  %vm1609_vm3 = vcmask (!%p166_p9), 97280   ;;  %vm1646_vm4 = vcmask (!%p166_p9), 130048  }
  0x10   : > { %s2833_s10 = smov (!%p166_p9), 20   ;;  %s2834_s20 = smov (!%p166_p9), 24   ;;  %2668 = vmatprep.subr.bf16.mxu0 (!%p166_p9), %v2667_v15  ;;  %vm1683_vm5 = vcmask (!%p166_p9), 162816   ;;  %vm1720_vm6 = vcmask (!%p166_p9), 195584   ;;  %vm1757_vm7 = vcmask (!%p166_p9), 228352   ;;  %vm1794_vm8 = vcmask (!%p166_p9), 261120  }
  0x11   : > { %2670 = vmatpush3.bf16.msra.mxu0 (!%p166_p9), %v2667_v15  ;;  %s2835_s29 = smov (!%p166_p9), 28   ;;  %s2836_s12 = smov (!%p166_p9), 32   ;;  %vm1843_vm9 = vcmask (!%p166_p9), 293888   ;;  %vm2838_vm10 = vmmov (!%p166_p9), 0  }
  0x12   : > { %2672 = vmatprep.subr.bf16.mxu0 (!%p166_p9), %v2671_v21 }
  0x15   : > { %s191_s27 = scalar_select %p190_p10, %s2887_s19, 1  ;;  %2674 = vmatpush3.bf16.msra.mxu0 %v2671_v21 }
  0x16   : > { %2600 = vmatprep.subr.msk.mxu0 %vm1952_vm0, %v1835_v22 }
  0x17   : > { %s2713_s28 = smul.u32 344, %s191_s27 }
  0x19   : > { %s2919_s5 = scalar_lea.vmem %s4292_s0, %s2713_s28  ;;  %2601 = vmatpush3.msk.msra.mxu0 %vm1952_vm0, %v1835_v22 }
  0x1a   : > { %v267_v0 = vld [vmem:[%s2919_s5 + $0x2] sm:$0xff]  ;;  %v268_v2 = vld [vmem:[%s2919_s5 + $0xa] sm:$0xff]  ;;  %v270_v4 = vld [vmem:[%s2919_s5 + $0x1a] sm:$0xff] }
  0x1b   : > { %v231_v1 = vld [vmem:[%s2919_s5 + $0x1] sm:$0xff]  ;;  %631 = vrot.lane.b32.xlu1 %v267_v0, %s2829_s6  ;;  %v232_v3 = vld [vmem:[%s2919_s5 + $0x9] sm:$0xff]  ;;  %v269_v5 = vld [vmem:[%s2919_s5 + $0x12] sm:$0xff] }
  0x1c   : > { %487 = vrot.lane.b32.xlu0 %v231_v1, %s2830_s7  ;;  %v233_v6 = vld [vmem:[%s2919_s5 + $0x11] sm:$0xff]  ;;  %v306_v9 = vld [vmem:[%s2919_s5 + $0x1b] sm:$0xff]  ;;  %v343_v11 = vld [vmem:[%s2919_s5 + $0x24] sm:$0xff] }
  0x1d   : > { %v305_v7 = vld [vmem:[%s2919_s5 + $0x13] sm:$0xff]  ;;  %v342_v12 = vld [vmem:[%s2919_s5 + $0x1c] sm:$0xff]  ;;  %v379_v19 = vld [vmem:[%s2919_s5 + $0x25] sm:$0xff] }
  0x1e   : > { %v341_v8 = vld [vmem:[%s2919_s5 + $0x14] sm:$0xff]  ;;  %v271_v16 = vld [vmem:[%s2919_s5 + $0x22] sm:$0xff]  ;;  %v344_v20 = vld [vmem:[%s2919_s5 + $0x2c] sm:$0xff] }
  0x1f   : > { %633 = vrot.lane.b32.xlu1 %v268_v2, %s2829_s6  ;;  %v234_v10 = vld [vmem:[%s2919_s5 + $0x19] sm:$0xff]  ;;  %v307_v23 = vld [vmem:[%s2919_s5 + $0x23] sm:$0xff]  ;;  %v380_v26 = vld [vmem:[%s2919_s5 + $0x2d] sm:$0xff] }
  0x20   : > { %489 = vrot.lane.b32.xlu0 %v232_v3, %s2830_s7  ;;  %v272_v24 = vld [vmem:[%s2919_s5 + $0x2a] sm:$0xff]  ;;  %v235_v28 = vld [vmem:[%s2919_s5 + $0x21] sm:$0xff]  ;;  %v345_v31 = vld [vmem:[%s2919_s5 + $0x34] sm:$0xff] }
  0x21   : > { %v415_v25 = vld [vmem:[%s2919_s5 + $0x26] sm:$0xff]  ;;  %v416_v29 = vld [vmem:[%s2919_s5 + $0x2e] sm:$0xff]  ;;  %v346_v34 = vld [vmem:[%s2919_s5 + $0x3c] sm:$0xff] }
  0x22   : > { %v308_v27 = vld [vmem:[%s2919_s5 + $0x2b] sm:$0xff]  ;;  %v381_v33 = vld [vmem:[%s2919_s5 + $0x35] sm:$0xff]  ;;  %v382_v38 = vld [vmem:[%s2919_s5 + $0x3d] sm:$0xff] }
  0x23   : > { %743 = vrot.lane.b32.xlu1 %v270_v4, %s2831_s8  ;;  %v236_v30 = vld [vmem:[%s2919_s5 + $0x29] sm:$0xff]  ;;  %v273_v32 = vld [vmem:[%s2919_s5 + $0x32] sm:$0xff]  ;;  %v274_v36 = vld [vmem:[%s2919_s5 + $0x3a] sm:$0xff] }
  0x24   : > { %741 = vrot.lane.b32.xlu0 %v269_v5, %s2831_s8  ;;  %v309_v35 = vld [vmem:[%s2919_s5 + $0x33] sm:$0xff]  ;;  %v310_v39 = vld [vmem:[%s2919_s5 + $0x3b] sm:$0xff]  ;;  %v347_v43 = vld [vmem:[%s2919_s5 + $0x44] sm:$0xff] }
  0x25   : > { %v417_v37 = vld [vmem:[%s2919_s5 + $0x36] sm:$0xff]  ;;  %v418_v41 = vld [vmem:[%s2919_s5 + $0x3e] sm:$0xff]  ;;  %v348_v46 = vld [vmem:[%s2919_s5 + $0x4c] sm:$0xff] }
  0x26   : > { %v237_v40 = vld [vmem:[%s2919_s5 + $0x31] sm:$0xff]  ;;  %v238_v42 = vld [vmem:[%s2919_s5 + $0x39] sm:$0xff]  ;;  %v275_v44 = vld [vmem:[%s2919_s5 + $0x42] sm:$0xff] }
  0x27   : > { %491 = vrot.lane.b32.xlu1 %v233_v6, %s2830_s7  ;;  %v383_v45 = vld [vmem:[%s2919_s5 + $0x45] sm:$0xff]  ;;  %v384_v50 = vld [vmem:[%s2919_s5 + $0x4d] sm:$0xff]  ;;  %v385_v63 = vld [vmem:[%s2919_s5 + $0x55] sm:$0xff] }
  0x28   : > { %885 = vrot.lane.b32.xlu0 %v305_v7, %s2832_s9  ;;  %v311_v47 = vld [vmem:[%s2919_s5 + $0x43] sm:$0xff]  ;;  %v312_v51 = vld [vmem:[%s2919_s5 + $0x4b] sm:$0xff]  ;;  %v349_v57 = vld [vmem:[%s2919_s5 + $0x54] sm:$0xff] }
  0x29   : > { %v276_v48 = vld [vmem:[%s2919_s5 + $0x4a] sm:$0xff]  ;;  %v239_v52 = vld [vmem:[%s2919_s5 + $0x41] sm:$0xff]  ;;  %v277_v60 = vld [vmem:[%s2919_s5 + $0x52] sm:$0xff] }
  0x2a   : > { %v419_v49 = vld [vmem:[%s2919_s5 + $0x46] sm:$0xff]  ;;  %v420_v53 = vld [vmem:[%s2919_s5 + $0x4e] sm:$0xff]  ;;  %v350_v0 = vld [vmem:[%s2919_s5 + $0x5c] sm:$0xff] }
  0x2b   : > { %1029 = vrot.lane.b32.xlu1 %v341_v8, %s2833_s10  ;;  %v240_v54 = vld [vmem:[%s2919_s5 + $0x49] sm:$0xff]  ;;  %v313_v3 = vld [vmem:[%s2919_s5 + $0x53] sm:$0xff]  ;;  %v386_v8 = vld [vmem:[%s2919_s5 + $0x5d] sm:$0xff] }
  0x2c   : > { %887 = vrot.lane.b32.xlu0 %v306_v9, %s2832_s9  ;;  %v421_v7 = vld [vmem:[%s2919_s5 + $0x56] sm:$0xff]  ;;  %v422_v15 = vld [vmem:[%s2919_s5 + $0x5e] sm:$0xff] }
  0x2d   : > { %v195_v18 = vld [vmem:[%s2919_s5] sm:$0xff] }
  0x2f   : > { %635 = vrot.lane.b32.xlu1 %v269_v5, %s2829_s6 }
  0x30   : > { %493 = vrot.lane.b32.xlu0 %v234_v10, %s2830_s7 }
  0x33   : > { %1139 = vrot.lane.b32.xlu1 %v343_v11, %s2834_s20 }
  0x34   : > { %1031 = vrot.lane.b32.xlu0 %v342_v12, %s2833_s10  ;;  %v241_v12 = vld [vmem:[%s2919_s5 + $0x51] sm:$0xff] }
  0x37   : > { %745 = vrot.lane.b32.xlu1 %v271_v16, %s2831_s8 }
  0x38   : > { %637 = vrot.lane.b32.xlu0 %v270_v4, %s2829_s6  ;;  %v278_v4 = vld [vmem:[%s2919_s5 + $0x5a] sm:$0xff] }
  0x3b   : > { %1283 = vrot.lane.b32.xlu1 %v379_v19, %s2835_s29  ;;  %v242_v19 = vld [vmem:[%s2919_s5 + $0x59] sm:$0xff] }
  0x3c   : > { %1141 = vrot.lane.b32.xlu0 %v344_v20, %s2834_s20 }
  0x3f   : > { %889 = vrot.lane.b32.xlu1 %v307_v23, %s2832_s9 }
  0x40   : > { %747 = vrot.lane.b32.xlu0 %v272_v24, %s2831_s8 }
  0x43   : > { %1427 = vrot.lane.b32.xlu1 %v415_v25, %s2836_s12 }
  0x44   : > { %1285 = vrot.lane.b32.xlu0 %v380_v26, %s2835_s29 }
  0x47   : > { %891 = vrot.lane.b32.xlu1 %v308_v27, %s2832_s9 }
  0x48   : > { %495 = vrot.lane.b32.xlu0 %v235_v28, %s2830_s7  ;;  %v196_v28 = vld [vmem:[%s2919_s5 + $0x8] sm:$0xff] }
  0x4b   : > { %1429 = vrot.lane.b32.xlu1 %v416_v29, %s2836_s12 }
  0x4c   : > { %1033 = vrot.lane.b32.xlu0 %v343_v11, %s2833_s10  ;;  %v314_v11 = vld [vmem:[%s2919_s5 + $0x5b] sm:$0xff] }
  0x4f   : > { %639 = vrot.lane.b32.xlu1 %v271_v16, %s2829_s6 }
  0x50   : > { %497 = vrot.lane.b32.xlu0 %v236_v30, %s2830_s7 }
  0x53   : > { %1143 = vrot.lane.b32.xlu1 %v345_v31, %s2834_s20 }
  0x54   : > { %1035 = vrot.lane.b32.xlu0 %v344_v20, %s2833_s10 }
  0x57   : > { %749 = vrot.lane.b32.xlu1 %v273_v32, %s2831_s8 }
  0x58   : > { %641 = vrot.lane.b32.xlu0 %v272_v24, %s2829_s6  ;;  %v351_v24 = vld [vmem:[%s2919_s5 + $0x64] sm:$0xff] }
  0x5b   : > { %1287 = vrot.lane.b32.xlu1 %v381_v33, %s2835_s29 }
  0x5c   : > { %1145 = vrot.lane.b32.xlu0 %v346_v34, %s2834_s20 }
  0x5f   : > { %893 = vrot.lane.b32.xlu1 %v309_v35, %s2832_s9 }
  0x60   : > { %751 = vrot.lane.b32.xlu0 %v274_v36, %s2831_s8 }
  0x63   : > { %1431 = vrot.lane.b32.xlu1 %v417_v37, %s2836_s12 }
  0x64   : > { %1289 = vrot.lane.b32.xlu0 %v382_v38, %s2835_s29 }
  0x67   : > { %895 = vrot.lane.b32.xlu1 %v310_v39, %s2832_s9  ;;  %v387_v39 = vld [vmem:[%s2919_s5 + $0x65] sm:$0xff] }
  0x68   : > { %499 = vrot.lane.b32.xlu0 %v237_v40, %s2830_s7  ;;  %v352_v40 = vld [vmem:[%s2919_s5 + $0x6c] sm:$0xff] }
  0x6b   : > { %1433 = vrot.lane.b32.xlu1 %v418_v41, %s2836_s12 }
  0x6c   : > { %1037 = vrot.lane.b32.xlu0 %v345_v31, %s2833_s10 }
  0x6f   : > { %643 = vrot.lane.b32.xlu1 %v273_v32, %s2829_s6  ;;  %v279_v32 = vld [vmem:[%s2919_s5 + $0x62] sm:$0xff] }
  0x70   : > { %501 = vrot.lane.b32.xlu0 %v238_v42, %s2830_s7 }
  0x73   : > { %1147 = vrot.lane.b32.xlu1 %v347_v43, %s2834_s20 }
  0x74   : > { %1039 = vrot.lane.b32.xlu0 %v346_v34, %s2833_s10 }
  0x77   : > { %753 = vrot.lane.b32.xlu1 %v275_v44, %s2831_s8 }
  0x78   : > { %645 = vrot.lane.b32.xlu0 %v274_v36, %s2829_s6 }
  0x7b   : > { %1291 = vrot.lane.b32.xlu1 %v383_v45, %s2835_s29 }
  0x7c   : > { %1149 = vrot.lane.b32.xlu0 %v348_v46, %s2834_s20 }
  0x7f   : > { %897 = vrot.lane.b32.xlu1 %v311_v47, %s2832_s9  ;;  %v315_v47 = vld [vmem:[%s2919_s5 + $0x63] sm:$0xff] }
  0x80   : > { %755 = vrot.lane.b32.xlu0 %v276_v48, %s2831_s8 }
  0x83   : > { %1435 = vrot.lane.b32.xlu1 %v419_v49, %s2836_s12 }
  0x84   : > { %1293 = vrot.lane.b32.xlu0 %v384_v50, %s2835_s29 }
  0x87   : > { %899 = vrot.lane.b32.xlu1 %v312_v51, %s2832_s9 }
  0x88   : > { %503 = vrot.lane.b32.xlu0 %v239_v52, %s2830_s7 }
  0x8b   : > { %1437 = vrot.lane.b32.xlu1 %v420_v53, %s2836_s12  ;;  %v423_v53 = vld [vmem:[%s2919_s5 + $0x66] sm:$0xff] }
  0x8c   : > { %1041 = vrot.lane.b32.xlu0 %v347_v43, %s2833_s10 }
  0x8d   : > { %v632_v55 = vpop.permute.xlu1 %631 }
  0x8e   : > { %v488_v56 = vpop.permute.xlu0 %487 }
  0x8f   : > { %647 = vrot.lane.b32.xlu1 %v275_v44, %s2829_s6  ;;  %v1536_v20 = vsel %vm1535_vm1, %v195_v18, %v488_v56 }
  0x90   : > { %505 = vrot.lane.b32.xlu0 %v240_v54, %s2830_s7  ;;  %v1573_v23 = vsel %vm1572_vm2, %v1536_v20, %v632_v55  ;;  %v388_v54 = vld [vmem:[%s2919_s5 + $0x6d] sm:$0xff] }
  0x91   : > { %v3045_v58 = vpop.permute.xlu1 %633 }
  0x92   : > { %v3047_v59 = vpop.permute.xlu0 %489 }
  0x93   : > { %1151 = vrot.lane.b32.xlu1 %v349_v57, %s2834_s20  ;;  %v1537_v33 = vsel %vm1535_vm1, %v196_v28, %v3047_v59 }
  0x94   : > { %1043 = vrot.lane.b32.xlu0 %v348_v46, %s2833_s10  ;;  %v1574_v38 = vsel %vm1572_vm2, %v1537_v33, %v3045_v58  ;;  %v243_v58 = vld [vmem:[%s2919_s5 + $0x61] sm:$0xff] }
  0x95   : > { %v3052_v61 = vpop.permute.xlu1 %743 }
  0x96   : > { %v742_v62 = vpop.permute.xlu0 %741  ;;  %v1611_v41 = vsel %vm1609_vm3, %v1574_v38, %v3052_v61  ;;  %v424_v61 = vld [vmem:[%s2919_s5 + $0x6e] sm:$0xff] }
  0x97   : > { %757 = vrot.lane.b32.xlu1 %v277_v60, %s2831_s8  ;;  %v1610_v25 = vsel %vm1609_vm3, %v1573_v23, %v742_v62  ;;  %v389_v23 = vld [vmem:[%s2919_s5 + $0x75] sm:$0xff] }
  0x98   : > { %649 = vrot.lane.b32.xlu0 %v276_v48, %s2829_s6  ;;  %v280_v48 = vld [vmem:[%s2919_s5 + $0x6a] sm:$0xff] }
  0x99   : > { %v3058_v1 = vpop.permute.xlu1 %491 }
  0x9a   : > { %v886_v2 = vpop.permute.xlu0 %885 }
  0x9b   : > { %1295 = vrot.lane.b32.xlu1 %v385_v63, %s2835_s29  ;;  %v1647_v29 = vsel %vm1646_vm4, %v1610_v25, %v886_v2  ;;  %v244_v2 = vld [vmem:[%s2919_s5 + $0x69] sm:$0xff] }
  0x9c   : > { %1153 = vrot.lane.b32.xlu0 %v350_v0, %s2834_s20 }
  0x9d   : > { %v1030_v5 = vpop.permute.xlu1 %1029 }
  0x9e   : > { %v3064_v6 = vpop.permute.xlu0 %887  ;;  %v1684_v30 = vsel %vm1683_vm5, %v1647_v29, %v1030_v5 }
  0x9f   : > { %901 = vrot.lane.b32.xlu1 %v313_v3, %s2832_s9  ;;  %v1648_v44 = vsel %vm1646_vm4, %v1611_v41, %v3064_v6 }
  0xa0   : > { %759 = vrot.lane.b32.xlu0 %v278_v4, %s2831_s8 }
  0xa1   : > { %v3070_v9 = vpop.permute.xlu1 %635 }
  0xa2   : > { %v3072_v10 = vpop.permute.xlu0 %493 }
  0xa3   : > { %1439 = vrot.lane.b32.xlu1 %v421_v7, %s2836_s12  ;;  %v353_v7 = vld [vmem:[%s2919_s5 + $0x74] sm:$0xff] }
  0xa4   : > { %1297 = vrot.lane.b32.xlu0 %v386_v8, %s2835_s29 }
  0xa5   : > { %v1140_v13 = vpop.permute.xlu1 %1139 }
  0xa6   : > { %v1032_v14 = vpop.permute.xlu0 %1031  ;;  %v1721_v31 = vsel %vm1720_vm6, %v1684_v30, %v1140_v13  ;;  %v317_v30 = vld [vmem:[%s2919_s5 + $0x73] sm:$0xff] }
  0xa7   : > { %903 = vrot.lane.b32.xlu1 %v314_v11, %s2832_s9  ;;  %v1685_v45 = vsel %vm1683_vm5, %v1648_v44, %v1032_v14  ;;  %v426_v44 = vld [vmem:[%s2919_s5 + $0x7e] sm:$0xff] }
  0xa8   : > { %507 = vrot.lane.b32.xlu0 %v241_v12, %s2830_s7 }
  0xa9   : > { %v3081_v16 = vpop.permute.xlu1 %745 }
  0xaa   : > { %v3083_v17 = vpop.permute.xlu0 %637 }
  0xab   : > { %1441 = vrot.lane.b32.xlu1 %v422_v15, %s2836_s12  ;;  %v281_v15 = vld [vmem:[%s2919_s5 + $0x72] sm:$0xff] }
  0xac   : > { %1045 = vrot.lane.b32.xlu0 %v349_v57, %s2833_s10  ;;  %v316_v57 = vld [vmem:[%s2919_s5 + $0x6b] sm:$0xff] }
  0xad   : > { %v1284_v21 = vpop.permute.xlu1 %1283 }
  0xae   : > { %v1142_v22 = vpop.permute.xlu0 %1141  ;;  %v1758_v34 = vsel %vm1757_vm7, %v1721_v31, %v1284_v21 }
  0xaf   : > { %651 = vrot.lane.b32.xlu1 %v277_v60, %s2829_s6  ;;  %v1722_v46 = vsel %vm1720_vm6, %v1685_v45, %v1142_v22 }
  0xb0   : > { %509 = vrot.lane.b32.xlu0 %v242_v19, %s2830_s7 }
  0xb1   : > { %v3095_v26 = vpop.permute.xlu1 %889 }
  0xb2   : > { %v3097_v27 = vpop.permute.xlu0 %747 }
  0xb3   : > { %1155 = vrot.lane.b32.xlu1 %v351_v24, %s2834_s20 }
  0xb4   : > { %1047 = vrot.lane.b32.xlu0 %v350_v0, %s2833_s10  ;;  %v197_v0 = vld [vmem:[%s2919_s5 + $0x10] sm:$0xff] }
  0xb5   : > { %v1428_v35 = vpop.permute.xlu1 %1427  ;;  %v1538_v5 = vsel %vm1535_vm1, %v197_v0, %v3058_v1 }
  0xb6   : > { %v1286_v36 = vpop.permute.xlu0 %1285  ;;  %v1795_v37 = vsel %vm1794_vm8, %v1758_v34, %v1428_v35  ;;  %v1575_v6 = vsel %vm1572_vm2, %v1538_v5, %v3070_v9  ;;  %v198_v9 = vld [vmem:[%s2919_s5 + $0x18] sm:$0xff] }
  0xb7   : > { %761 = vrot.lane.b32.xlu1 %v279_v32, %s2831_s8  ;;  %2602 = vmatprep.mubr.msk.f32.mxu0 %vm1843_vm9, %v1795_v37  ;;  %v1759_v49 = vsel %vm1757_vm7, %v1722_v46, %v1286_v36  ;;  %v1612_v8 = vsel %vm1609_vm3, %v1575_v6, %v3081_v16  ;;  %v1539_v21 = vsel %vm1535_vm1, %v198_v9, %v3072_v10  ;;  %v425_v35 = vld [vmem:[%s2919_s5 + $0x76] sm:$0xff]  ;;  %v391_v6 = vld [vmem:[%s2919_s5 + $0x85] sm:$0xff] }
  0xb8   : > { %653 = vrot.lane.b32.xlu0 %v278_v4, %s2829_s6  ;;  %v1649_v13 = vsel %vm1646_vm4, %v1612_v8, %v3095_v26  ;;  %v1576_v22 = vsel %vm1572_vm2, %v1539_v21, %v3083_v17  ;;  %v390_v36 = vld [vmem:[%s2919_s5 + $0x7d] sm:$0xff] }
  0xb9   : > { %v3119_v42 = vpop.permute.xlu1 %891  ;;  %v1613_v25 = vsel %vm1609_vm3, %v1576_v22, %v3097_v27  ;;  %v282_v27 = vld [vmem:[%s2919_s5 + $0x7a] sm:$0xff]  ;;  %v319_v9 = vld [vmem:[%s2919_s5 + $0x83] sm:$0xff] }
  0xba   : > { %v3121_v43 = vpop.permute.xlu0 %495  ;;  %v1650_v10 = vsel %vm1646_vm4, %v1613_v25, %v3119_v42 }
  0xbb   : > { %1299 = vrot.lane.b32.xlu1 %v387_v39, %s2835_s29  ;;  %v318_v39 = vld [vmem:[%s2919_s5 + $0x7b] sm:$0xff] }
  0xbc   : > { %1157 = vrot.lane.b32.xlu0 %v352_v40, %s2834_s20 }
  0xbd   : > { %v1430_v50 = vpop.permute.xlu1 %1429 }
  0xbe   : > { %v1034_v51 = vpop.permute.xlu0 %1033  ;;  %v1796_v52 = vsel %vm1794_vm8, %v1759_v49, %v1430_v50 }
  0xbf   : > { %905 = vrot.lane.b32.xlu1 %v315_v47, %s2832_s9  ;;  %2603 = vmatmul.mubr.msk.f32.vlgmr.msra.gmra.mrb[0].mxu0 %vm1843_vm9, %v1796_v52  ;;  %v1686_v1 = vsel %vm1683_vm5, %v1649_v13, %v1034_v51  ;;  %v199_v47 = vld [vmem:[%s2919_s5 + $0x20] sm:$0xff] }
  0xc0   : > { %763 = vrot.lane.b32.xlu0 %v280_v48, %s2831_s8  ;;  %v1540_v51 = vsel %vm1535_vm1, %v199_v47, %v3121_v43 }
  0xc1   : > { %v3138_v55 = vpop.permute.xlu1 %639 }
  0xc2   : > { %v3140_v56 = vpop.permute.xlu0 %497  ;;  %v1577_v52 = vsel %vm1572_vm2, %v1540_v51, %v3138_v55  ;;  %v200_v55 = vld [vmem:[%s2919_s5 + $0x28] sm:$0xff] }
  0xc3   : > { %1443 = vrot.lane.b32.xlu1 %v423_v53, %s2836_s12  ;;  %v355_v53 = vld [vmem:[%s2919_s5 + $0x84] sm:$0xff] }
  0xc4   : > { %1301 = vrot.lane.b32.xlu0 %v388_v54, %s2835_s29 }
  0xc5   : > { %v1144_v59 = vpop.permute.xlu1 %1143 }
  0xc6   : > { %v1036_v60 = vpop.permute.xlu0 %1035  ;;  %v1723_v14 = vsel %vm1720_vm6, %v1686_v1, %v1144_v59 }
  0xc7   : > { %907 = vrot.lane.b32.xlu1 %v316_v57, %s2832_s9  ;;  %v1687_v29 = vsel %vm1683_vm5, %v1650_v10, %v1036_v60  ;;  %v428_v10 = vld [vmem:[%s2919_s5 + $0x8e] sm:$0xff] }
  0xc8   : > { %511 = vrot.lane.b32.xlu0 %v243_v58, %s2830_s7 }
  0xc9   : > { %v3149_v62 = vpop.permute.xlu1 %749 }
  0xca   : > { %v3151_v63 = vpop.permute.xlu0 %641  ;;  %v1614_v54 = vsel %vm1609_vm3, %v1577_v52, %v3149_v62  ;;  %v393_v52 = vld [vmem:[%s2919_s5 + $0x95] sm:$0xff] }
  0xcb   : > { %1445 = vrot.lane.b32.xlu1 %v424_v61, %s2836_s12  ;;  %v283_v61 = vld [vmem:[%s2919_s5 + $0x82] sm:$0xff] }
  0xcc   : > { %1049 = vrot.lane.b32.xlu0 %v351_v24, %s2833_s10  ;;  %v354_v24 = vld [vmem:[%s2919_s5 + $0x7c] sm:$0xff] }
  0xcd   : > { %v1288_v3 = vpop.permute.xlu1 %1287 }
  0xce   : > { %v1146_v4 = vpop.permute.xlu0 %1145  ;;  %v1760_v16 = vsel %vm1757_vm7, %v1723_v14, %v1288_v3 }
  0xcf   : > { %655 = vrot.lane.b32.xlu1 %v279_v32, %s2829_s6  ;;  %v1724_v17 = vsel %vm1720_vm6, %v1687_v29, %v1146_v4  ;;  %v1541_v4 = vsel %vm1535_vm1, %v200_v55, %v3140_v56  ;;  %v321_v55 = vld [vmem:[%s2919_s5 + $0x93] sm:$0xff] }
  0xd0   : > { %513 = vrot.lane.b32.xlu0 %v244_v2, %s2830_s7  ;;  %v1578_v5 = vsel %vm1572_vm2, %v1541_v4, %v3151_v63 }
  0xd1   : > { %v3166_v11 = vpop.permute.xlu1 %893 }
  0xd2   : > { %v3168_v12 = vpop.permute.xlu0 %751  ;;  %v1651_v59 = vsel %vm1646_vm4, %v1614_v54, %v3166_v11 }
  0xd3   : > { %1159 = vrot.lane.b32.xlu1 %v353_v7, %s2834_s20  ;;  %v1615_v8 = vsel %vm1609_vm3, %v1578_v5, %v3168_v12  ;;  %v284_v12 = vld [vmem:[%s2919_s5 + $0x8a] sm:$0xff] }
  0xd4   : > { %1051 = vrot.lane.b32.xlu0 %v352_v40, %s2833_s10  ;;  %v245_v40 = vld [vmem:[%s2919_s5 + $0x71] sm:$0xff] }
  0xd5   : > { %v1432_v18 = vpop.permute.xlu1 %1431 }
  0xd6   : > { %v1290_v19 = vpop.permute.xlu0 %1289  ;;  %v1797_v20 = vsel %vm1794_vm8, %v1760_v16, %v1432_v18 }
  0xd7   : > { %765 = vrot.lane.b32.xlu1 %v281_v15, %s2831_s8  ;;  %2605 = vmatprep.mubr.msk.f32.mxu0 %vm1843_vm9, %v1797_v20  ;;  %v1761_v31 = vsel %vm1757_vm7, %v1724_v17, %v1290_v19  ;;  %v427_v19 = vld [vmem:[%s2919_s5 + $0x86] sm:$0xff] }
  0xd8   : > { %657 = vrot.lane.b32.xlu0 %v280_v48, %s2829_s6  ;;  %v246_v48 = vld [vmem:[%s2919_s5 + $0x79] sm:$0xff]  ;;  %v392_v20 = vld [vmem:[%s2919_s5 + $0x8d] sm:$0xff] }
  0xd9   : > { %v3191_v26 = vpop.permute.xlu1 %895 }
  0xda   : > { %v3193_v28 = vpop.permute.xlu0 %499  ;;  %v1652_v56 = vsel %vm1646_vm4, %v1615_v8, %v3191_v26 }
  0xdb   : > { %1303 = vrot.lane.b32.xlu1 %v389_v23, %s2835_s29  ;;  %v320_v23 = vld [vmem:[%s2919_s5 + $0x8b] sm:$0xff] }
  0xdc   : > { %1161 = vrot.lane.b32.xlu0 %v354_v24, %s2834_s20 }
  0xdd   : > { %v1434_v32 = vpop.permute.xlu1 %1433 }
  0xde   : > { %v1038_v33 = vpop.permute.xlu0 %1037  ;;  %v1798_v34 = vsel %vm1794_vm8, %v1761_v31, %v1434_v32 }
  0xdf   : > { %909 = vrot.lane.b32.xlu1 %v317_v30, %s2832_s9  ;;  %2606 = vmatmul.mubr.msk.f32.gmra.mrb[2].mxu0 %vm1843_vm9, %v1798_v34  ;;  %v1688_v43 = vsel %vm1683_vm5, %v1651_v59, %v1038_v33  ;;  %v201_v30 = vld [vmem:[%s2919_s5 + $0x30] sm:$0xff] }
  0xe0   : > { %767 = vrot.lane.b32.xlu0 %v282_v27, %s2831_s8  ;;  %v1542_v33 = vsel %vm1535_vm1, %v201_v30, %v3193_v28 }
  0xe1   : > { %v3210_v37 = vpop.permute.xlu1 %643 }
  0xe2   : > { %v3212_v38 = vpop.permute.xlu0 %501  ;;  %v1579_v34 = vsel %vm1572_vm2, %v1542_v33, %v3210_v37  ;;  %v202_v37 = vld [vmem:[%s2919_s5 + $0x38] sm:$0xff] }
  0xe3   : > { %1447 = vrot.lane.b32.xlu1 %v425_v35, %s2836_s12  ;;  %v357_v35 = vld [vmem:[%s2919_s5 + $0x94] sm:$0xff] }
  0xe4   : > { %1305 = vrot.lane.b32.xlu0 %v390_v36, %s2835_s29 }
  0xe5   : > { %v1148_v41 = vpop.permute.xlu1 %1147 }
  0xe6   : > { %v1040_v42 = vpop.permute.xlu0 %1039  ;;  %v1725_v60 = vsel %vm1720_vm6, %v1688_v43, %v1148_v41 }
  0xe7   : > { %911 = vrot.lane.b32.xlu1 %v318_v39, %s2832_s9  ;;  %v1689_v1 = vsel %vm1683_vm5, %v1652_v56, %v1040_v42  ;;  %v430_v56 = vld [vmem:[%s2919_s5 + $0x9e] sm:$0xff] }
  0xe8   : > { %515 = vrot.lane.b32.xlu0 %v245_v40, %s2830_s7 }
  0xe9   : > { %v3221_v45 = vpop.permute.xlu1 %753 }
  0xea   : > { %v3223_v46 = vpop.permute.xlu0 %645  ;;  %v1616_v36 = vsel %vm1609_vm3, %v1579_v34, %v3221_v45  ;;  %v395_v34 = vld [vmem:[%s2919_s5 + $0xa5] sm:$0xff] }
  0xeb   : > { %1449 = vrot.lane.b32.xlu1 %v426_v44, %s2836_s12  ;;  %v285_v44 = vld [vmem:[%s2919_s5 + $0x92] sm:$0xff] }
  0xec   : > { %1053 = vrot.lane.b32.xlu0 %v353_v7, %s2833_s10  ;;  %v356_v7 = vld [vmem:[%s2919_s5 + $0x8c] sm:$0xff] }
  0xed   : > { %v1292_v49 = vpop.permute.xlu1 %1291 }
  0xee   : > { %v1150_v50 = vpop.permute.xlu0 %1149  ;;  %v1762_v62 = vsel %vm1757_vm7, %v1725_v60, %v1292_v49 }
  0xef   : > { %659 = vrot.lane.b32.xlu1 %v281_v15, %s2829_s6  ;;  %v1726_v63 = vsel %vm1720_vm6, %v1689_v1, %v1150_v50  ;;  %v1543_v50 = vsel %vm1535_vm1, %v202_v37, %v3212_v38  ;;  %v323_v37 = vld [vmem:[%s2919_s5 + $0xa3] sm:$0xff] }
  0xf0   : > { %517 = vrot.lane.b32.xlu0 %v246_v48, %s2830_s7  ;;  %v1580_v51 = vsel %vm1572_vm2, %v1543_v50, %v3223_v46 }
  0xf1   : > { %v3238_v57 = vpop.permute.xlu1 %897 }
  0xf2   : > { %v3240_v58 = vpop.permute.xlu0 %755  ;;  %v1653_v41 = vsel %vm1646_vm4, %v1616_v36, %v3238_v57 }
  0xf3   : > { %1163 = vrot.lane.b32.xlu1 %v355_v53, %s2834_s20  ;;  %v1617_v54 = vsel %vm1609_vm3, %v1580_v51, %v3240_v58  ;;  %v286_v58 = vld [vmem:[%s2919_s5 + $0x9a] sm:$0xff] }
  0xf4   : > { %1055 = vrot.lane.b32.xlu0 %v354_v24, %s2833_s10  ;;  %v247_v24 = vld [vmem:[%s2919_s5 + $0x81] sm:$0xff] }
  0xf5   : > { %v1436_v0 = vpop.permute.xlu1 %1435 }
  0xf6   : > { %v1294_v2 = vpop.permute.xlu0 %1293  ;;  %v1799_v3 = vsel %vm1794_vm8, %v1762_v62, %v1436_v0 }
  0xf7   : > { %769 = vrot.lane.b32.xlu1 %v283_v61, %s2831_s8  ;;  %2608 = vmatprep.mubr.msk.f32.mxu0 %vm1843_vm9, %v1799_v3  ;;  %v1763_v14 = vsel %vm1757_vm7, %v1726_v63, %v1294_v2  ;;  %v429_v2 = vld [vmem:[%s2919_s5 + $0x96] sm:$0xff] }
  0xf8   : > { %661 = vrot.lane.b32.xlu0 %v282_v27, %s2829_s6  ;;  %v248_v27 = vld [vmem:[%s2919_s5 + $0x89] sm:$0xff]  ;;  %v394_v3 = vld [vmem:[%s2919_s5 + $0x9d] sm:$0xff] }
  0xf9   : > { %v3263_v11 = vpop.permute.xlu1 %899 }
  0xfa   : > { %v3265_v13 = vpop.permute.xlu0 %503  ;;  %v1654_v38 = vsel %vm1646_vm4, %v1617_v54, %v3263_v11 }
  0xfb   : > { %1307 = vrot.lane.b32.xlu1 %v391_v6, %s2835_s29  ;;  %v322_v6 = vld [vmem:[%s2919_s5 + $0x9b] sm:$0xff] }
  0xfc   : > { %1165 = vrot.lane.b32.xlu0 %v356_v7, %s2834_s20 }
  0xfd   : > { %v1438_v15 = vpop.permute.xlu1 %1437 }
  0xfe   : > { %v1042_v16 = vpop.permute.xlu0 %1041  ;;  %v1800_v18 = vsel %vm1794_vm8, %v1763_v14, %v1438_v15 }
  0xff   : > { %913 = vrot.lane.b32.xlu1 %v319_v9, %s2832_s9  ;;  %2609 = vmatmul.mubr.msk.f32.gmra.mrb[4].mxu0 %vm1843_vm9, %v1800_v18  ;;  %v1690_v28 = vsel %vm1683_vm5, %v1653_v41, %v1042_v16  ;;  %v203_v9 = vld [vmem:[%s2919_s5 + $0x40] sm:$0xff] }
 0x100   : > { %771 = vrot.lane.b32.xlu0 %v284_v12, %s2831_s8  ;;  %v1544_v16 = vsel %vm1535_vm1, %v203_v9, %v3265_v13 }
 0x101   : > { %v3282_v21 = vpop.permute.xlu1 %647 }
 0x102   : > { %v3284_v22 = vpop.permute.xlu0 %505  ;;  %v1581_v18 = vsel %vm1572_vm2, %v1544_v16, %v3282_v21  ;;  %v204_v21 = vld [vmem:[%s2919_s5 + $0x48] sm:$0xff] }
 0x103   : > { %1451 = vrot.lane.b32.xlu1 %v427_v19, %s2836_s12  ;;  %v359_v19 = vld [vmem:[%s2919_s5 + $0xa4] sm:$0xff] }
 0x104   : > { %1309 = vrot.lane.b32.xlu0 %v392_v20, %s2835_s29 }
 0x105   : > { %v1152_v25 = vpop.permute.xlu1 %1151 }
 0x106   : > { %v1044_v26 = vpop.permute.xlu0 %1043  ;;  %v1727_v42 = vsel %vm1720_vm6, %v1690_v28, %v1152_v25 }
 0x107   : > { %915 = vrot.lane.b32.xlu1 %v320_v23, %s2832_s9  ;;  %v1691_v43 = vsel %vm1683_vm5, %v1654_v38, %v1044_v26  ;;  %v432_v38 = vld [vmem:[%s2919_s5 + $0xae] sm:$0xff] }
 0x108   : > { %519 = vrot.lane.b32.xlu0 %v247_v24, %s2830_s7 }
 0x109   : > { %v3293_v29 = vpop.permute.xlu1 %757 }
 0x10a   : > { %v3295_v17 = vpop.permute.xlu0 %649  ;;  %v1618_v20 = vsel %vm1609_vm3, %v1581_v18, %v3293_v29  ;;  %v397_v18 = vld [vmem:[%s2919_s5 + $0xb5] sm:$0xff] }
 0x10b   : > { %1453 = vrot.lane.b32.xlu1 %v428_v10, %s2836_s12  ;;  %v287_v10 = vld [vmem:[%s2919_s5 + $0xa2] sm:$0xff] }
 0x10c   : > { %1057 = vrot.lane.b32.xlu0 %v355_v53, %s2833_s10  ;;  %v358_v53 = vld [vmem:[%s2919_s5 + $0x9c] sm:$0xff] }
 0x10d   : > { %v1296_v31 = vpop.permute.xlu1 %1295 }
 0x10e   : > { %v1154_v32 = vpop.permute.xlu0 %1153  ;;  %v1764_v45 = vsel %vm1757_vm7, %v1727_v42, %v1296_v31 }
 0x10f   : > { %663 = vrot.lane.b32.xlu1 %v283_v61, %s2829_s6  ;;  %v1728_v46 = vsel %vm1720_vm6, %v1691_v43, %v1154_v32  ;;  %v1545_v32 = vsel %vm1535_vm1, %v204_v21, %v3284_v22  ;;  %v325_v21 = vld [vmem:[%s2919_s5 + $0xb3] sm:$0xff] }
 0x110   : > { %521 = vrot.lane.b32.xlu0 %v248_v27, %s2830_s7  ;;  %v1582_v33 = vsel %vm1572_vm2, %v1545_v32, %v3295_v17 }
 0x111   : > { %v3310_v39 = vpop.permute.xlu1 %901 }
 0x112   : > { %v3312_v40 = vpop.permute.xlu0 %759  ;;  %v1655_v25 = vsel %vm1646_vm4, %v1618_v20, %v3310_v39 }
 0x113   : > { %1167 = vrot.lane.b32.xlu1 %v357_v35, %s2834_s20  ;;  %v1619_v36 = vsel %vm1609_vm3, %v1582_v33, %v3312_v40  ;;  %v288_v40 = vld [vmem:[%s2919_s5 + $0xaa] sm:$0xff] }
 0x114   : > { %1059 = vrot.lane.b32.xlu0 %v356_v7, %s2833_s10  ;;  %v249_v7 = vld [vmem:[%s2919_s5 + $0x91] sm:$0xff] }
 0x115   : > { %v1440_v47 = vpop.permute.xlu1 %1439 }
 0x116   : > { %v1298_v48 = vpop.permute.xlu0 %1297  ;;  %v1801_v49 = vsel %vm1794_vm8, %v1764_v45, %v1440_v47 }
 0x117   : > { %773 = vrot.lane.b32.xlu1 %v285_v44, %s2831_s8  ;;  %2611 = vmatprep.mubr.msk.f32.mxu0 %vm1843_vm9, %v1801_v49  ;;  %v1765_v60 = vsel %vm1757_vm7, %v1728_v46, %v1298_v48  ;;  %v431_v48 = vld [vmem:[%s2919_s5 + $0xa6] sm:$0xff] }
 0x118   : > { %665 = vrot.lane.b32.xlu0 %v284_v12, %s2829_s6  ;;  %v250_v12 = vld [vmem:[%s2919_s5 + $0x99] sm:$0xff]  ;;  %v396_v49 = vld [vmem:[%s2919_s5 + $0xad] sm:$0xff] }
 0x119   : > { %v3335_v57 = vpop.permute.xlu1 %903 }
 0x11a   : > { %v3337_v59 = vpop.permute.xlu0 %507  ;;  %v1656_v22 = vsel %vm1646_vm4, %v1619_v36, %v3335_v57 }
 0x11b   : > { %1311 = vrot.lane.b32.xlu1 %v393_v52, %s2835_s29  ;;  %v324_v52 = vld [vmem:[%s2919_s5 + $0xab] sm:$0xff] }
 0x11c   : > { %1169 = vrot.lane.b32.xlu0 %v358_v53, %s2834_s20 }
 0x11d   : > { %v1442_v61 = vpop.permute.xlu1 %1441 }
 0x11e   : > { %v1046_v62 = vpop.permute.xlu0 %1045  ;;  %v1802_v0 = vsel %vm1794_vm8, %v1765_v60, %v1442_v61 }
 0x11f   : > { %917 = vrot.lane.b32.xlu1 %v321_v55, %s2832_s9  ;;  %2612 = vmatmul.mubr.msk.f32.gmra.mrb[6].mxu0 %vm1843_vm9, %v1802_v0  ;;  %v1692_v13 = vsel %vm1683_vm5, %v1655_v25, %v1046_v62  ;;  %v205_v55 = vld [vmem:[%s2919_s5 + $0x50] sm:$0xff] }
 0x120   : > { %775 = vrot.lane.b32.xlu0 %v286_v58, %s2831_s8  ;;  %v1546_v62 = vsel %vm1535_vm1, %v205_v55, %v3337_v59 }
 0x121   : > { %v3354_v4 = vpop.permute.xlu1 %651 }
 0x122   : > { %v3356_v5 = vpop.permute.xlu0 %509  ;;  %v1583_v0 = vsel %vm1572_vm2, %v1546_v62, %v3354_v4  ;;  %v206_v4 = vld [vmem:[%s2919_s5 + $0x58] sm:$0xff] }
 0x123   : > { %1455 = vrot.lane.b32.xlu1 %v429_v2, %s2836_s12  ;;  %v361_v2 = vld [vmem:[%s2919_s5 + $0xb4] sm:$0xff] }
 0x124   : > { %1313 = vrot.lane.b32.xlu0 %v394_v3, %s2835_s29 }
 0x125   : > { %v1156_v8 = vpop.permute.xlu1 %1155 }
 0x126   : > { %v1048_v11 = vpop.permute.xlu0 %1047  ;;  %v1729_v26 = vsel %vm1720_vm6, %v1692_v13, %v1156_v8 }
 0x127   : > { %919 = vrot.lane.b32.xlu1 %v322_v6, %s2832_s9  ;;  %v1693_v28 = vsel %vm1683_vm5, %v1656_v22, %v1048_v11  ;;  %v434_v22 = vld [vmem:[%s2919_s5 + $0xbe] sm:$0xff] }
 0x128   : > { %523 = vrot.lane.b32.xlu0 %v249_v7, %s2830_s7 }
 0x129   : > { %v3365_v1 = vpop.permute.xlu1 %761 }
 0x12a   : > { %v3367_v63 = vpop.permute.xlu0 %653  ;;  %v1620_v3 = vsel %vm1609_vm3, %v1583_v0, %v3365_v1  ;;  %v399_v0 = vld [vmem:[%s2919_s5 + $0xc5] sm:$0xff] }
 0x12b   : > { %1457 = vrot.lane.b32.xlu1 %v430_v56, %s2836_s12  ;;  %v289_v56 = vld [vmem:[%s2919_s5 + $0xb2] sm:$0xff] }
 0x12c   : > { %1061 = vrot.lane.b32.xlu0 %v357_v35, %s2833_s10  ;;  %v360_v35 = vld [vmem:[%s2919_s5 + $0xac] sm:$0xff] }
 0x12d   : > { %v1300_v14 = vpop.permute.xlu1 %1299 }
 0x12e   : > { %v1158_v15 = vpop.permute.xlu0 %1157  ;;  %v1766_v29 = vsel %vm1757_vm7, %v1729_v26, %v1300_v14 }
 0x12f   : > { %667 = vrot.lane.b32.xlu1 %v285_v44, %s2829_s6  ;;  %v1730_v17 = vsel %vm1720_vm6, %v1693_v28, %v1158_v15  ;;  %v1547_v15 = vsel %vm1535_vm1, %v206_v4, %v3356_v5  ;;  %v327_v4 = vld [vmem:[%s2919_s5 + $0xc3] sm:$0xff] }
 0x130   : > { %525 = vrot.lane.b32.xlu0 %v250_v12, %s2830_s7  ;;  %v1584_v16 = vsel %vm1572_vm2, %v1547_v15, %v3367_v63 }
 0x131   : > { %v3382_v23 = vpop.permute.xlu1 %905 }
 0x132   : > { %v3384_v24 = vpop.permute.xlu0 %763  ;;  %v1657_v8 = vsel %vm1646_vm4, %v1620_v3, %v3382_v23 }
 0x133   : > { %1171 = vrot.lane.b32.xlu1 %v359_v19, %s2834_s20  ;;  %v1621_v20 = vsel %vm1609_vm3, %v1584_v16, %v3384_v24  ;;  %v290_v24 = vld [vmem:[%s2919_s5 + $0xba] sm:$0xff] }
 0x134   : > { %1063 = vrot.lane.b32.xlu0 %v358_v53, %s2833_s10  ;;  %v251_v53 = vld [vmem:[%s2919_s5 + $0xa1] sm:$0xff] }
 0x135   : > { %v1444_v30 = vpop.permute.xlu1 %1443 }
 0x136   : > { %v1302_v27 = vpop.permute.xlu0 %1301  ;;  %v1803_v31 = vsel %vm1794_vm8, %v1766_v29, %v1444_v30 }
 0x137   : > { %777 = vrot.lane.b32.xlu1 %v287_v10, %s2831_s8  ;;  %2614 = vmatprep.mubr.msk.f32.mxu0 %vm1843_vm9, %v1803_v31  ;;  %v1767_v42 = vsel %vm1757_vm7, %v1730_v17, %v1302_v27  ;;  %v433_v27 = vld [vmem:[%s2919_s5 + $0xb6] sm:$0xff] }
 0x138   : > { %669 = vrot.lane.b32.xlu0 %v286_v58, %s2829_s6  ;;  %v252_v58 = vld [vmem:[%s2919_s5 + $0xa9] sm:$0xff]  ;;  %v398_v31 = vld [vmem:[%s2919_s5 + $0xbd] sm:$0xff] }
 0x139   : > { %v3407_v39 = vpop.permute.xlu1 %907 }
 0x13a   : > { %v3409_v41 = vpop.permute.xlu0 %511  ;;  %v1658_v5 = vsel %vm1646_vm4, %v1621_v20, %v3407_v39 }
 0x13b   : > { %1315 = vrot.lane.b32.xlu1 %v395_v34, %s2835_s29  ;;  %v326_v34 = vld [vmem:[%s2919_s5 + $0xbb] sm:$0xff] }
 0x13c   : > { %1173 = vrot.lane.b32.xlu0 %v360_v35, %s2834_s20 }
 0x13d   : > { %v1446_v44 = vpop.permute.xlu1 %1445 }
 0x13e   : > { %v1050_v45 = vpop.permute.xlu0 %1049  ;;  %v1804_v47 = vsel %vm1794_vm8, %v1767_v42, %v1446_v44 }
 0x13f   : > { %921 = vrot.lane.b32.xlu1 %v323_v37, %s2832_s9  ;;  %2615 = vmatmul.mubr.msk.f32.gmra.mrb[8].mxu0 %vm1843_vm9, %v1804_v47  ;;  %v1694_v59 = vsel %vm1683_vm5, %v1657_v8, %v1050_v45  ;;  %v207_v37 = vld [vmem:[%s2919_s5 + $0x60] sm:$0xff] }
 0x140   : > { %779 = vrot.lane.b32.xlu0 %v288_v40, %s2831_s8  ;;  %v1548_v45 = vsel %vm1535_vm1, %v207_v37, %v3409_v41 }
 0x141   : > { %v3426_v50 = vpop.permute.xlu1 %655 }
 0x142   : > { %v3428_v51 = vpop.permute.xlu0 %513  ;;  %v1585_v47 = vsel %vm1572_vm2, %v1548_v45, %v3426_v50  ;;  %v208_v50 = vld [vmem:[%s2919_s5 + $0x68] sm:$0xff] }
 0x143   : > { %1459 = vrot.lane.b32.xlu1 %v431_v48, %s2836_s12  ;;  %v363_v48 = vld [vmem:[%s2919_s5 + $0xc4] sm:$0xff] }
 0x144   : > { %1317 = vrot.lane.b32.xlu0 %v396_v49, %s2835_s29 }
 0x145   : > { %v1160_v54 = vpop.permute.xlu1 %1159 }
 0x146   : > { %v1052_v57 = vpop.permute.xlu0 %1051  ;;  %v1731_v11 = vsel %vm1720_vm6, %v1694_v59, %v1160_v54 }
 0x147   : > { %923 = vrot.lane.b32.xlu1 %v324_v52, %s2832_s9  ;;  %v1695_v13 = vsel %vm1683_vm5, %v1658_v5, %v1052_v57  ;;  %v436_v5 = vld [vmem:[%s2919_s5 + $0xce] sm:$0xff] }
 0x148   : > { %527 = vrot.lane.b32.xlu0 %v251_v53, %s2830_s7 }
 0x149   : > { %v3437_v43 = vpop.permute.xlu1 %765 }
 0x14a   : > { %v3439_v46 = vpop.permute.xlu0 %657  ;;  %v1622_v49 = vsel %vm1609_vm3, %v1585_v47, %v3437_v43 }
 0x14b   : > { %1461 = vrot.lane.b32.xlu1 %v432_v38, %s2836_s12  ;;  %v291_v38 = vld [vmem:[%s2919_s5 + $0xc2] sm:$0xff] }
 0x14c   : > { %1065 = vrot.lane.b32.xlu0 %v359_v19, %s2833_s10  ;;  %v362_v19 = vld [vmem:[%s2919_s5 + $0xbc] sm:$0xff] }
 0x14d   : > { %v1304_v60 = vpop.permute.xlu1 %1303 }
 0x14e   : > { %v1162_v61 = vpop.permute.xlu0 %1161  ;;  %v1768_v1 = vsel %vm1757_vm7, %v1731_v11, %v1304_v60 }
 0x14f   : > { %671 = vrot.lane.b32.xlu1 %v287_v10, %s2829_s6  ;;  %v1732_v63 = vsel %vm1720_vm6, %v1695_v13, %v1162_v61  ;;  %v1549_v61 = vsel %vm1535_vm1, %v208_v50, %v3428_v51 }
 0x150   : > { %529 = vrot.lane.b32.xlu0 %v252_v58, %s2830_s7  ;;  %v1586_v62 = vsel %vm1572_vm2, %v1549_v61, %v3439_v46 }
 0x151   : > { %v3454_v6 = vpop.permute.xlu1 %909 }
 0x152   : > { %v3456_v7 = vpop.permute.xlu0 %767  ;;  %v1659_v54 = vsel %vm1646_vm4, %v1622_v49, %v3454_v6 }
 0x153   : > { %1175 = vrot.lane.b32.xlu1 %v361_v2, %s2834_s20  ;;  %v1623_v3 = vsel %vm1609_vm3, %v1586_v62, %v3456_v7  ;;  %v292_v7 = vld [vmem:[%s2919_s5 + $0xca] sm:$0xff]  ;;  %v294_v62 = vld [vmem:[%s2919_s5 + $0xda] sm:$0xff] }
 0x154   : > { %1067 = vrot.lane.b32.xlu0 %v360_v35, %s2833_s10  ;;  %v253_v35 = vld [vmem:[%s2919_s5 + $0xb1] sm:$0xff] }
 0x155   : > { %v1448_v9 = vpop.permute.xlu1 %1447 }
 0x156   : > { %v1306_v12 = vpop.permute.xlu0 %1305  ;;  %v1805_v14 = vsel %vm1794_vm8, %v1768_v1, %v1448_v9 }
 0x157   : > { %781 = vrot.lane.b32.xlu1 %v289_v56, %s2831_s8  ;;  %2617 = vmatprep.mubr.msk.f32.mxu0 %vm1843_vm9, %v1805_v14  ;;  %v1769_v26 = vsel %vm1757_vm7, %v1732_v63, %v1306_v12  ;;  %v435_v12 = vld [vmem:[%s2919_s5 + $0xc6] sm:$0xff] }
 0x158   : > { %673 = vrot.lane.b32.xlu0 %v288_v40, %s2829_s6  ;;  %v254_v40 = vld [vmem:[%s2919_s5 + $0xb9] sm:$0xff]  ;;  %v400_v14 = vld [vmem:[%s2919_s5 + $0xcd] sm:$0xff] }
 0x159   : > { %v3479_v23 = vpop.permute.xlu1 %911 }
 0x15a   : > { %v3481_v25 = vpop.permute.xlu0 %515  ;;  %v1660_v51 = vsel %vm1646_vm4, %v1623_v3, %v3479_v23 }
 0x15b   : > { %1319 = vrot.lane.b32.xlu1 %v397_v18, %s2835_s29  ;;  %v328_v18 = vld [vmem:[%s2919_s5 + $0xcb] sm:$0xff] }
 0x15c   : > { %1177 = vrot.lane.b32.xlu0 %v362_v19, %s2834_s20 }
 0x15d   : > { %v1450_v10 = vpop.permute.xlu1 %1449 }
 0x15e   : > { %v1054_v29 = vpop.permute.xlu0 %1053  ;;  %v1806_v30 = vsel %vm1794_vm8, %v1769_v26, %v1450_v10 }
 0x15f   : > { %925 = vrot.lane.b32.xlu1 %v325_v21, %s2832_s9  ;;  %2618 = vmatmul.mubr.msk.f32.gmra.mrb[10].mxu0 %vm1843_vm9, %v1806_v30  ;;  %v1696_v41 = vsel %vm1683_vm5, %v1659_v54, %v1054_v29  ;;  %v209_v21 = vld [vmem:[%s2919_s5 + $0x70] sm:$0xff] }
 0x160   : > { %783 = vrot.lane.b32.xlu0 %v290_v24, %s2831_s8  ;;  %v1550_v29 = vsel %vm1535_vm1, %v209_v21, %v3481_v25  ;;  %v3605_v25 = vld [vmem:[%s4294_s2] ss:$0 sm:$0xff] }
 0x161   : > { %v3498_v32 = vpop.permute.xlu1 %659 }
 0x162   : > { %v3500_v33 = vpop.permute.xlu0 %517  ;;  %v1587_v30 = vsel %vm1572_vm2, %v1550_v29, %v3498_v32  ;;  %v210_v32 = vld [vmem:[%s2919_s5 + $0x78] sm:$0xff] }
 0x163   : > { %1463 = vrot.lane.b32.xlu1 %v433_v27, %s2836_s12  ;;  %v365_v27 = vld [vmem:[%s2919_s5 + $0xd4] sm:$0xff]  ;;  %v1551_v54 = vsel %vm1535_vm1, %v210_v32, %v3500_v33 }
 0x164   : > { %1321 = vrot.lane.b32.xlu0 %v398_v31, %s2835_s29 }
 0x165   : > { %v1164_v36 = vpop.permute.xlu1 %1163 }
 0x166   : > { %v1056_v39 = vpop.permute.xlu0 %1055  ;;  %v1733_v57 = vsel %vm1720_vm6, %v1696_v41, %v1164_v36 }
 0x167   : > { %927 = vrot.lane.b32.xlu1 %v326_v34, %s2832_s9  ;;  %v1697_v59 = vsel %vm1683_vm5, %v1660_v51, %v1056_v39 }
 0x168   : > { %531 = vrot.lane.b32.xlu0 %v253_v35, %s2830_s7 }
 0x169   : > { %v3509_v28 = vpop.permute.xlu1 %769 }
 0x16a   : > { %v3511_v17 = vpop.permute.xlu0 %661  ;;  %v1624_v31 = vsel %vm1609_vm3, %v1587_v30, %v3509_v28 }
 0x16b   : > { %1465 = vrot.lane.b32.xlu1 %v434_v22, %s2836_s12  ;;  %v1588_v50 = vsel %vm1572_vm2, %v1551_v54, %v3511_v17 }
 0x16c   : > { %1069 = vrot.lane.b32.xlu0 %v361_v2, %s2833_s10  ;;  %v364_v2 = vld [vmem:[%s2919_s5 + $0xcc] sm:$0xff] }
 0x16d   : > { %v1308_v42 = vpop.permute.xlu1 %1307 }
 0x16e   : > { %v1166_v44 = vpop.permute.xlu0 %1165  ;;  %v1770_v43 = vsel %vm1757_vm7, %v1733_v57, %v1308_v42  ;;  %v293_v42 = vld [vmem:[%s2919_s5 + $0xd2] sm:$0xff] }
 0x16f   : > { %675 = vrot.lane.b32.xlu1 %v289_v56, %s2829_s6  ;;  %v1734_v46 = vsel %vm1720_vm6, %v1697_v59, %v1166_v44  ;;  %v401_v57 = vld [vmem:[%s2919_s5 + $0xd5] sm:$0xff]  ;;  %v402_v59 = vld [vmem:[%s2919_s5 + $0xdd] sm:$0xff] }
 0x170   : > { %533 = vrot.lane.b32.xlu0 %v254_v40, %s2830_s7 }
 0x171   : > { %v3526_v52 = vpop.permute.xlu1 %913 }
 0x172   : > { %v3528_v53 = vpop.permute.xlu0 %771  ;;  %v1661_v36 = vsel %vm1646_vm4, %v1624_v31, %v3526_v52  ;;  %v212_v31 = vld [vmem:[%s2919_s5 + $0x88] sm:$0xff] }
 0x173   : > { %1179 = vrot.lane.b32.xlu1 %v363_v48, %s2834_s20 }
 0x174   : > { %1071 = vrot.lane.b32.xlu0 %v362_v19, %s2833_s10  ;;  %v255_v19 = vld [vmem:[%s2919_s5 + $0xc1] sm:$0xff] }
 0x175   : > { %v1452_v55 = vpop.permute.xlu1 %1451 }
 0x176   : > { %v1310_v58 = vpop.permute.xlu0 %1309  ;;  %v1807_v60 = vsel %vm1794_vm8, %v1770_v43, %v1452_v55  ;;  %v1625_v43 = vsel %vm1609_vm3, %v1588_v50, %v3528_v53  ;;  %v329_v53 = vld [vmem:[%s2919_s5 + $0xd3] sm:$0xff] }
 0x177   : > { %785 = vrot.lane.b32.xlu1 %v291_v38, %s2831_s8  ;;  %2620 = vmatprep.mubr.msk.f32.mxu0 %vm1843_vm9, %v1807_v60  ;;  %v1771_v11 = vsel %vm1757_vm7, %v1734_v46, %v1310_v58 }
 0x178   : > { %677 = vrot.lane.b32.xlu0 %v290_v24, %s2829_s6  ;;  %v256_v24 = vld [vmem:[%s2919_s5 + $0xc9] sm:$0xff] }
 0x179   : > { %v3551_v6 = vpop.permute.xlu1 %915 }
 0x17a   : > { %v3553_v8 = vpop.permute.xlu0 %519  ;;  %v1662_v60 = vsel %vm1646_vm4, %v1625_v43, %v3551_v6  ;;  %v437_v6 = vld [vmem:[%s2919_s5 + $0xd6] sm:$0xff] }
 0x17b   : > { %1323 = vrot.lane.b32.xlu1 %v399_v0, %s2835_s29 }
 0x17c   : > { %1181 = vrot.lane.b32.xlu0 %v364_v2, %s2834_s20 }
 0x17d   : > { %v1454_v56 = vpop.permute.xlu1 %1453 }
 0x17e   : > { %v1058_v1 = vpop.permute.xlu0 %1057  ;;  %v1808_v9 = vsel %vm1794_vm8, %v1771_v11, %v1454_v56  ;;  %v257_v11 = vld [vmem:[%s2919_s5 + $0xd1] sm:$0xff] }
 0x17f   : > { %929 = vrot.lane.b32.xlu1 %v327_v4, %s2832_s9  ;;  %2621 = vmatmul.mubr.msk.f32.gmra.mrb[12].mxu0 %vm1843_vm9, %v1808_v9  ;;  %v1698_v39 = vsel %vm1683_vm5, %v1661_v36, %v1058_v1  ;;  %v438_v9 = vld [vmem:[%s2919_s5 + $0xde] sm:$0xff] }
 0x180   : > { %787 = vrot.lane.b32.xlu0 %v292_v7, %s2831_s8 }
 0x181   : > { %v3570_v15 = vpop.permute.xlu1 %663 }
 0x182   : > { %v3572_v16 = vpop.permute.xlu0 %521 }
 0x183   : > { %1467 = vrot.lane.b32.xlu1 %v435_v12, %s2836_s12 }
 0x184   : > { %1325 = vrot.lane.b32.xlu0 %v400_v14, %s2835_s29 }
 0x185   : > { %v1168_v20 = vpop.permute.xlu1 %1167 }
 0x186   : > { %v1060_v23 = vpop.permute.xlu0 %1059  ;;  %v1735_v28 = vsel %vm1720_vm6, %v1698_v39, %v1168_v20  ;;  %v295_v39 = vld [vmem:[%s2919_s5 + $0xe2] sm:$0xff] }
 0x187   : > { %931 = vrot.lane.b32.xlu1 %v328_v18, %s2832_s9  ;;  %v1699_v17 = vsel %vm1683_vm5, %v1662_v60, %v1060_v23  ;;  %v211_v18 = vld [vmem:[%s2919_s5 + $0x80] sm:$0xff] }
 0x188   : > { %535 = vrot.lane.b32.xlu0 %v255_v19, %s2830_s7  ;;  %v258_v19 = vld [vmem:[%s2919_s5 + $0xd9] sm:$0xff] }
 0x189   : > { %v3581_v13 = vpop.permute.xlu1 %773 }
 0x18a   : > { %v3583_v63 = vpop.permute.xlu0 %665 }
 0x18b   : > { %1469 = vrot.lane.b32.xlu1 %v436_v5, %s2836_s12  ;;  %v1552_v5 = vsel %vm1535_vm1, %v211_v18, %v3553_v8 }
 0x18c   : > { %1073 = vrot.lane.b32.xlu0 %v363_v48, %s2833_s10  ;;  %v1589_v21 = vsel %vm1572_vm2, %v1552_v5, %v3570_v15 }
 0x18d   : > { %v1312_v26 = vpop.permute.xlu1 %1311 }
 0x18e   : > { %v1170_v10 = vpop.permute.xlu0 %1169  ;;  %v1772_v44 = vsel %vm1757_vm7, %v1735_v28, %v1312_v26  ;;  %v1626_v26 = vsel %vm1609_vm3, %v1589_v21, %v3581_v13 }
 0x18f   : > { %679 = vrot.lane.b32.xlu1 %v291_v38, %s2829_s6  ;;  %v366_v38 = vld [vmem:[%s2919_s5 + $0xdc] sm:$0xff]  ;;  %v1736_v61 = vsel %vm1720_vm6, %v1699_v17, %v1170_v10 }
 0x190   : > { %537 = vrot.lane.b32.xlu0 %v256_v24, %s2830_s7  ;;  %v367_v24 = vld [vmem:[%s2919_s5 + $0xe4] sm:$0xff] }
 0x191   : > { %v3598_v34 = vpop.permute.xlu1 %917 }
 0x192   : > { %v3600_v35 = vpop.permute.xlu0 %775  ;;  %v2604_v22 = vpop.f32.mrb[0].mxu0  ;;  %v1663_v30 = vsel %vm1646_vm4, %v1626_v26, %v3598_v34 }
 0x193   : > { %1183 = vrot.lane.b32.xlu1 %v365_v27, %s2834_s20  ;;  %v2028_v37 = vadd.f32 %v2604_v22, %v3605_v25  ;;  %v2022_v40 = vpop.f32.mrb[1].mxu0 }
 0x194   : > { %1075 = vrot.lane.b32.xlu0 %v364_v2, %s2833_s10  ;;  %v2023_v45 = vadd.f32 %v3605_v25, %v2022_v40 }
 0x195   : > { %v1456_v47 = vpop.permute.xlu1 %1455  ;;  %v2202_v49 = vmax.f32 %v2028_v37, 0.0 }
 0x196   : > { %v1314_v48 = vpop.permute.xlu0 %1313  ;;  %v1809_v52 = vsel %vm1794_vm8, %v1772_v44, %v1456_v47  ;;  %v2201_v41 = vmax.f32 %v2023_v45, 0.0  ;;  %v403_v47 = vld [vmem:[%s2919_s5 + $0xe5] sm:$0xff] }
 0x197   : > { %789 = vrot.lane.b32.xlu1 %v293_v42, %s2831_s8  ;;  %2623 = vmatprep.mubr.msk.f32.mxu0 %vm1843_vm9, %v1809_v52  ;;  %v1773_v0 = vsel %vm1757_vm7, %v1736_v61, %v1314_v48  ;;  %v368_v48 = vld [vmem:[%s2919_s5 + $0xec] sm:$0xff] }
 0x198   : > { %681 = vrot.lane.b32.xlu0 %v292_v7, %s2829_s6  ;;  %v3634_v58 = vpack.c.bf16 %v2202_v49, %v2201_v41  ;;  %v330_v7 = vld [vmem:[%s2919_s5 + $0xdb] sm:$0xff]  ;;  %v404_v61 = vld [vmem:[%s2919_s5 + $0xed] sm:$0xff] }
 0x199   : > { %v3630_v55 = vpop.permute.xlu1 %919 }
 0x19a   : > { %v3632_v33 = vpop.permute.xlu0 %523 }
 0x19b   : > { %1327 = vrot.lane.b32.xlu1 %v401_v57, %s2835_s29  ;;  %v296_v57 = vld [vmem:[%s2919_s5 + $0xea] sm:$0xff] }
 0x19c   : > { %1185 = vrot.lane.b32.xlu0 %v366_v38, %s2834_s20 }
 0x19d   : > { %v1458_v2 = vpop.permute.xlu1 %1457 }
 0x19e   : > { %v1062_v3 = vpop.permute.xlu0 %1061  ;;  %v1810_v51 = vsel %vm1794_vm8, %v1773_v0, %v1458_v2  ;;  %v332_v0 = vld [vmem:[%s2919_s5 + $0xeb] sm:$0xff]  ;;  %v259_v2 = vld [vmem:[%s2919_s5 + $0xe1] sm:$0xff] }
 0x19f   : > { %933 = vrot.lane.b32.xlu1 %v329_v53, %s2832_s9  ;;  %2624 = vmatmul.mubr.msk.f32.gmra.mrb[14].mxu0 %vm1843_vm9, %v1810_v51  ;;  %v1700_v8 = vsel %vm1683_vm5, %v1663_v30, %v1062_v3  ;;  %v214_v30 = vld [vmem:[%s2919_s5 + $0x98] sm:$0xff] }
 0x1a0   : > { %791 = vrot.lane.b32.xlu0 %v294_v62, %s2831_s8 }
 0x1a1   : > { %v3651_v46 = vpop.permute.xlu1 %667 }
 0x1a2   : > { %v3653_v4 = vpop.permute.xlu0 %525 }
 0x1a3   : > { %1471 = vrot.lane.b32.xlu1 %v437_v6, %s2836_s12  ;;  %v440_v6 = vld [vmem:[%s2919_s5 + $0xee] sm:$0xff] }
 0x1a4   : > { %1329 = vrot.lane.b32.xlu0 %v402_v59, %s2835_s29 }
 0x1a5   : > { %v1172_v56 = vpop.permute.xlu1 %1171 }
 0x1a6   : > { %v1064_v1 = vpop.permute.xlu0 %1063  ;;  %v1737_v15 = vsel %vm1720_vm6, %v1700_v8, %v1172_v56  ;;  %v260_v56 = vld [vmem:[%s2919_s5 + $0xe9] sm:$0xff] }
 0x1a7   : > { %935 = vrot.lane.b32.xlu1 %v330_v7, %s2832_s9 }
 0x1a8   : > { %539 = vrot.lane.b32.xlu0 %v257_v11, %s2830_s7  ;;  %v213_v11 = vld [vmem:[%s2919_s5 + $0x90] sm:$0xff] }
 0x1a9   : > { %v3662_v12 = vpop.permute.xlu1 %777  ;;  %v1554_v18 = vsel %vm1535_vm1, %v213_v11, %v3632_v33 }
 0x1aa   : > { %v3664_v14 = vpop.permute.xlu0 %669 }
 0x1ab   : > { %1473 = vrot.lane.b32.xlu1 %v438_v9, %s2836_s12 }
 0x1ac   : > { %1077 = vrot.lane.b32.xlu0 %v365_v27, %s2833_s10 }
 0x1ad   : > { %v1316_v20 = vpop.permute.xlu1 %1315 }
 0x1ae   : > { %v1174_v23 = vpop.permute.xlu0 %1173  ;;  %v1774_v22 = vsel %vm1757_vm7, %v1737_v15, %v1316_v20  ;;  %v369_v20 = vld [vmem:[%s2919_s5 + $0xf4] sm:$0xff] }
 0x1af   : > { %683 = vrot.lane.b32.xlu1 %v293_v42, %s2829_s6  ;;  %v1553_v42 = vsel %vm1535_vm1, %v212_v31, %v3572_v16 }
 0x1b0   : > { %541 = vrot.lane.b32.xlu0 %v258_v19, %s2830_s7  ;;  %v1590_v45 = vsel %vm1572_vm2, %v1553_v42, %v3583_v63  ;;  %v1591_v19 = vsel %vm1572_vm2, %v1554_v18, %v3651_v46 }
 0x1b1   : > { %v3679_v10 = vpop.permute.xlu1 %921  ;;  %v1627_v49 = vsel %vm1609_vm3, %v1590_v45, %v3600_v35  ;;  %v331_v35 = vld [vmem:[%s2919_s5 + $0xe3] sm:$0xff] }
 0x1b2   : > { %v3681_v29 = vpop.permute.xlu0 %779  ;;  %v2607_v27 = vpop.f32.mrb[2].mxu0  ;;  %v1664_v41 = vsel %vm1646_vm4, %v1627_v49, %v3630_v55  ;;  %v439_v55 = vld [vmem:[%s2919_s5 + $0xe6] sm:$0xff] }
 0x1b3   : > { %1187 = vrot.lane.b32.xlu1 %v367_v24, %s2834_s20  ;;  %v2038_v13 = vadd.f32 %v2607_v27, %v3605_v25  ;;  %v2032_v36 = vpop.f32.mrb[3].mxu0  ;;  %v1701_v63 = vsel %vm1683_vm5, %v1664_v41, %v1064_v1  ;;  %v297_v27 = vld [vmem:[%s2919_s5 + $0xf2] sm:$0xff] }
 0x1b4   : > { %1079 = vrot.lane.b32.xlu0 %v366_v38, %s2833_s10  ;;  %v2033_v34 = vadd.f32 %v3605_v25, %v2032_v36  ;;  %v1738_v50 = vsel %vm1720_vm6, %v1701_v63, %v1174_v23  ;;  %v1628_v23 = vsel %vm1609_vm3, %v1591_v19, %v3662_v12 }
 0x1b5   : > { %v1460_v32 = vpop.permute.xlu1 %1459  ;;  %v2204_v37 = vmax.f32 %v2038_v13, 0.0 }
 0x1b6   : > { %v1318_v28 = vpop.permute.xlu0 %1317  ;;  %v1811_v40 = vsel %vm1794_vm8, %v1774_v22, %v1460_v32  ;;  %v2203_v44 = vmax.f32 %v2033_v34, 0.0  ;;  %v1555_v22 = vsel %vm1535_vm1, %v214_v30, %v3653_v4  ;;  %v3844_v30 = vld [vmem:[%s2919_s5 + $0x102] sm:$0xff] }
 0x1b7   : > { %793 = vrot.lane.b32.xlu1 %v295_v39, %s2831_s8  ;;  %2626 = vmatprep.mubr.msk.f32.mxu0 %vm1843_vm9, %v1811_v40  ;;  %v1775_v38 = vsel %vm1757_vm7, %v1738_v50, %v1318_v28  ;;  %v1592_v32 = vsel %vm1572_vm2, %v1555_v22, %v3664_v14  ;;  %v405_v28 = vld [vmem:[%s2919_s5 + $0xf5] sm:$0xff] }
 0x1b8   : > { %685 = vrot.lane.b32.xlu0 %v294_v62, %s2829_s6  ;;  %v3706_v52 = vpack.c.bf16 %v2204_v37, %v2203_v44  ;;  %v370_v37 = vld [vmem:[%s2919_s5 + $0xfc] sm:$0xff]  ;;  %v1629_v40 = vsel %vm1609_vm3, %v1592_v32, %v3681_v29  ;;  %v333_v29 = vld [vmem:[%s2919_s5 + $0xf3] sm:$0xff] }
 0x1b9   : > { %v3708_v16 = vpop.permute.xlu1 %923 }
 0x1ba   : > { %v3710_v54 = vpop.permute.xlu0 %527  ;;  %v1666_v45 = vsel %vm1646_vm4, %v1629_v40, %v3708_v16  ;;  %v441_v16 = vld [vmem:[%s2919_s5 + $0xf6] sm:$0xff]  ;;  %v3875_v40 = vld [vmem:[%s2919_s5 + $0x10a] sm:$0xff] }
 0x1bb   : > { %1331 = vrot.lane.b32.xlu1 %v403_v47, %s2835_s29 }
 0x1bc   : > { %1189 = vrot.lane.b32.xlu0 %v368_v48, %s2834_s20 }
 0x1bd   : > { %v1462_v43 = vpop.permute.xlu1 %1461 }
 0x1be   : > { %v1066_v60 = vpop.permute.xlu0 %1065  ;;  %v1812_v17 = vsel %vm1794_vm8, %v1775_v38, %v1462_v43  ;;  %v334_v43 = vld [vmem:[%s2919_s5 + $0xfb] sm:$0xff] }
 0x1bf   : > { %937 = vrot.lane.b32.xlu1 %v331_v35, %s2832_s9  ;;  %2627 = vmatmul.mubr.msk.f32.gmra.mrb[16].mxu0 %vm1843_vm9, %v1812_v17  ;;  %v406_v35 = vld [vmem:[%s2919_s5 + $0xfd] sm:$0xff] }
 0x1c0   : > { %795 = vrot.lane.b32.xlu0 %v296_v57, %s2831_s8 }
 0x1c1   : > { %v3727_v53 = vpop.permute.xlu1 %671 }
 0x1c2   : > { %v3729_v62 = vpop.permute.xlu0 %529 }
 0x1c3   : > { %1475 = vrot.lane.b32.xlu1 %v439_v55, %s2836_s12 }
 0x1c4   : > { %1333 = vrot.lane.b32.xlu0 %v404_v61, %s2835_s29  ;;  %v442_v61 = vld [vmem:[%s2919_s5 + $0xfe] sm:$0xff] }
 0x1c5   : > { %v1176_v3 = vpop.permute.xlu1 %1175 }
 0x1c6   : > { %v1068_v51 = vpop.permute.xlu0 %1067 }
 0x1c7   : > { %939 = vrot.lane.b32.xlu1 %v332_v0, %s2832_s9  ;;  %v1703_v14 = vsel %vm1683_vm5, %v1666_v45, %v1068_v51  ;;  %v262_v51 = vld [vmem:[%s2919_s5 + $0xf9] sm:$0xff] }
 0x1c8   : > { %543 = vrot.lane.b32.xlu0 %v259_v2, %s2830_s7 }
 0x1c9   : > { %v3738_v59 = vpop.permute.xlu1 %781 }
 0x1ca   : > { %v3740_v7 = vpop.permute.xlu0 %673 }
 0x1cb   : > { %1477 = vrot.lane.b32.xlu1 %v440_v6, %s2836_s12 }
 0x1cc   : > { %1081 = vrot.lane.b32.xlu0 %v367_v24, %s2833_s10  ;;  %v1665_v24 = vsel %vm1646_vm4, %v1628_v23, %v3679_v10 }
 0x1cd   : > { %v1320_v1 = vpop.permute.xlu1 %1319  ;;  %v1702_v33 = vsel %vm1683_vm5, %v1665_v24, %v1066_v60  ;;  %v261_v60 = vld [vmem:[%s2919_s5 + $0xf1] sm:$0xff] }
 0x1ce   : > { %v1178_v9 = vpop.permute.xlu0 %1177  ;;  %v1739_v46 = vsel %vm1720_vm6, %v1702_v33, %v1176_v3  ;;  %v215_v3 = vld [vmem:[%s2919_s5 + $0xa0] sm:$0xff]  ;;  %v216_v33 = vld [vmem:[%s2919_s5 + $0xa8] sm:$0xff] }
 0x1cf   : > { %687 = vrot.lane.b32.xlu1 %v295_v39, %s2829_s6  ;;  %v1776_v31 = vsel %vm1757_vm7, %v1739_v46, %v1320_v1  ;;  %v1740_v47 = vsel %vm1720_vm6, %v1703_v14, %v1178_v9  ;;  %v371_v9 = vld [vmem:[%s2919_s5 + $0x104] sm:$0xff] }
 0x1d0   : > { %545 = vrot.lane.b32.xlu0 %v260_v56, %s2830_s7  ;;  %v1556_v56 = vsel %vm1535_vm1, %v215_v3, %v3710_v54 }
 0x1d1   : > { %v3755_v5 = vpop.permute.xlu1 %925  ;;  %v1593_v1 = vsel %vm1572_vm2, %v1556_v56, %v3727_v53  ;;  %v264_v56 = vld [vmem:[%s2919_s5 + $0x109] sm:$0xff] }
 0x1d2   : > { %v3757_v21 = vpop.permute.xlu0 %783  ;;  %v2610_v26 = vpop.f32.mrb[4].mxu0  ;;  %v1630_v18 = vsel %vm1609_vm3, %v1593_v1, %v3738_v59 }
 0x1d3   : > { %1191 = vrot.lane.b32.xlu1 %v369_v20, %s2834_s20  ;;  %v2048_v12 = vadd.f32 %v2610_v26, %v3605_v25  ;;  %v2042_v8 = vpop.f32.mrb[5].mxu0  ;;  %v1667_v23 = vsel %vm1646_vm4, %v1630_v18, %v3755_v5 }
 0x1d4   : > { %1083 = vrot.lane.b32.xlu0 %v368_v48, %s2833_s10  ;;  %v2043_v10 = vadd.f32 %v3605_v25, %v2042_v8  ;;  %v298_v48 = vld [vmem:[%s2919_s5 + $0xfa] sm:$0xff] }
 0x1d5   : > { %v1464_v15 = vpop.permute.xlu1 %1463  ;;  %v2206_v36 = vmax.f32 %v2048_v12, 0.0 }
 0x1d6   : > { %v1322_v13 = vpop.permute.xlu0 %1321  ;;  %v1813_v39 = vsel %vm1794_vm8, %v1776_v31, %v1464_v15  ;;  %v2205_v34 = vmax.f32 %v2043_v10, 0.0  ;;  %v1557_v10 = vsel %vm1535_vm1, %v216_v33, %v3729_v62 }
 0x1d7   : > { %797 = vrot.lane.b32.xlu1 %v297_v27, %s2831_s8  ;;  %2629 = vmatprep.mubr.msk.f32.mxu0 %vm1843_vm9, %v1813_v39  ;;  %v1777_v49 = vsel %vm1757_vm7, %v1740_v47, %v1322_v13  ;;  %v1594_v13 = vsel %vm1572_vm2, %v1557_v10, %v3740_v7  ;;  %v372_v39 = vld [vmem:[%s2919_s5 + $0x10c] sm:$0xff] }
 0x1d8   : > { %689 = vrot.lane.b32.xlu0 %v296_v57, %s2829_s6  ;;  %v3782_v42 = vpack.c.bf16 %v2206_v36, %v2205_v34  ;;  %v407_v36 = vld [vmem:[%s2919_s5 + $0x105] sm:$0xff]  ;;  %v1631_v22 = vsel %vm1609_vm3, %v1594_v13, %v3757_v21  ;;  %v301_v10 = vld [vmem:[%s2919_s5 + $0x112] sm:$0xff] }
 0x1d9   : > { %v3784_v4 = vpop.permute.xlu1 %927  ;;  %v335_v21 = vld [vmem:[%s2919_s5 + $0x103] sm:$0xff] }
 0x1da   : > { %v3786_v44 = vpop.permute.xlu0 %531 }
 0x1db   : > { %1335 = vrot.lane.b32.xlu1 %v405_v28, %s2835_s29  ;;  %v1668_v28 = vsel %vm1646_vm4, %v1631_v22, %v3784_v4  ;;  %v443_v4 = vld [vmem:[%s2919_s5 + $0x106] sm:$0xff] }
 0x1dc   : > { %1193 = vrot.lane.b32.xlu0 %v370_v37, %s2834_s20 }
 0x1dd   : > { %v1466_v41 = vpop.permute.xlu1 %1465 }
 0x1de   : > { %v1070_v63 = vpop.permute.xlu0 %1069  ;;  %v1814_v50 = vsel %vm1794_vm8, %v1777_v49, %v1466_v41 }
 0x1df   : > { %941 = vrot.lane.b32.xlu1 %v333_v29, %s2832_s9  ;;  %2630 = vmatmul.mubr.msk.f32.gmra.mrb[18].mxu0 %vm1843_vm9, %v1814_v50  ;;  %v1704_v54 = vsel %vm1683_vm5, %v1667_v23, %v1070_v63  ;;  %v336_v63 = vld [vmem:[%s2919_s5 + $0x10b] sm:$0xff] }
 0x1e0   : > { %799 = vrot.lane.b32.xlu0 %v298_v48, %s2831_s8 }
 0x1e1   : > { %v3803_v57 = vpop.permute.xlu1 %675 }
 0x1e2   : > { %v3805_v38 = vpop.permute.xlu0 %533 }
 0x1e3   : > { %1479 = vrot.lane.b32.xlu1 %v441_v16, %s2836_s12 }
 0x1e4   : > { %1337 = vrot.lane.b32.xlu0 %v406_v35, %s2835_s29  ;;  %v263_v35 = vld [vmem:[%s2919_s5 + $0x101] sm:$0xff] }
 0x1e5   : > { %v1180_v17 = vpop.permute.xlu1 %1179 }
 0x1e6   : > { %v1072_v55 = vpop.permute.xlu0 %1071  ;;  %v1741_v53 = vsel %vm1720_vm6, %v1704_v54, %v1180_v17 }
 0x1e7   : > { %943 = vrot.lane.b32.xlu1 %v334_v43, %s2832_s9  ;;  %v1705_v7 = vsel %vm1683_vm5, %v1668_v28, %v1072_v55  ;;  %v444_v43 = vld [vmem:[%s2919_s5 + $0x10e] sm:$0xff]  ;;  %v410_v28 = vld [vmem:[%s2919_s5 + $0x11d] sm:$0xff] }
 0x1e8   : > { %547 = vrot.lane.b32.xlu0 %v261_v60, %s2830_s7  ;;  %v217_v55 = vld [vmem:[%s2919_s5 + $0xb0] sm:$0xff] }
 0x1e9   : > { %v3814_v0 = vpop.permute.xlu1 %785 }
 0x1ea   : > { %v3816_v2 = vpop.permute.xlu0 %677 }
 0x1eb   : > { %1481 = vrot.lane.b32.xlu1 %v442_v61, %s2836_s12  ;;  %v3904_v61 = vld [vmem:[%s2919_s5 + $0x114] sm:$0xff] }
 0x1ec   : > { %1085 = vrot.lane.b32.xlu0 %v369_v20, %s2833_s10 }
 0x1ed   : > { %v1324_v6 = vpop.permute.xlu1 %1323 }
 0x1ee   : > { %v1182_v11 = vpop.permute.xlu0 %1181  ;;  %v1778_v46 = vsel %vm1757_vm7, %v1741_v53, %v1324_v6  ;;  %v1558_v6 = vsel %vm1535_vm1, %v217_v55, %v3786_v44  ;;  %v409_v53 = vld [vmem:[%s2919_s5 + $0x115] sm:$0xff] }
 0x1ef   : > { %691 = vrot.lane.b32.xlu1 %v297_v27, %s2829_s6  ;;  %v266_v55 = vld [vmem:[%s2919_s5 + $0x119] sm:$0xff] }
 0x1f0   : > { %549 = vrot.lane.b32.xlu0 %v262_v51, %s2830_s7 }
 0x1f1   : > { %v3831_v19 = vpop.permute.xlu1 %929 }
 0x1f2   : > { %v3833_v20 = vpop.permute.xlu0 %787  ;;  %v2613_v24 = vpop.f32.mrb[6].mxu0 }
 0x1f3   : > { %1195 = vrot.lane.b32.xlu1 %v371_v9, %s2834_s20  ;;  %v2058_v59 = vadd.f32 %v2613_v24, %v3605_v25  ;;  %v2052_v26 = vpop.f32.mrb[7].mxu0 }
 0x1f4   : > { %1087 = vrot.lane.b32.xlu0 %v370_v37, %s2833_s10  ;;  %v2053_v5 = vadd.f32 %v3605_v25, %v2052_v26  ;;  %v1742_v37 = vsel %vm1720_vm6, %v1705_v7, %v1182_v11  ;;  %v1595_v11 = vsel %vm1572_vm2, %v1558_v6, %v3803_v57  ;;  %v218_v57 = vld [vmem:[%s2919_s5 + $0xb8] sm:$0xff] }
 0x1f5   : > { %v1468_v12 = vpop.permute.xlu1 %1467  ;;  %v2208_v27 = vmax.f32 %v2058_v59, 0.0  ;;  %v1632_v1 = vsel %vm1609_vm3, %v1595_v11, %v3814_v0  ;;  %v3931_v59 = vld [vmem:[%s2919_s5 + $0x11c] sm:$0xff] }
 0x1f6   : > { %v1326_v8 = vpop.permute.xlu0 %1325  ;;  %v1815_v31 = vsel %vm1794_vm8, %v1778_v46, %v1468_v12  ;;  %v2207_v15 = vmax.f32 %v2053_v5, 0.0  ;;  %v1669_v44 = vsel %vm1646_vm4, %v1632_v1, %v3831_v19 }
 0x1f7   : > { %801 = vrot.lane.b32.xlu1 %v3844_v30, %s2831_s8  ;;  %2632 = vmatprep.mubr.msk.f32.mxu0 %vm1843_vm9, %v1815_v31  ;;  %v1779_v45 = vsel %vm1757_vm7, %v1742_v37, %v1326_v8  ;;  %v1559_v8 = vsel %vm1535_vm1, %v218_v57, %v3805_v38 }
 0x1f8   : > { %693 = vrot.lane.b32.xlu0 %v298_v48, %s2829_s6  ;;  %v3861_v34 = vpack.c.bf16 %v2208_v27, %v2207_v15  ;;  %v408_v48 = vld [vmem:[%s2919_s5 + $0x10d] sm:$0xff]  ;;  %v1596_v31 = vsel %vm1572_vm2, %v1559_v8, %v3816_v2 }
 0x1f9   : > { %v3863_v62 = vpop.permute.xlu1 %931  ;;  %v1633_v15 = vsel %vm1609_vm3, %v1596_v31, %v3833_v20  ;;  %v445_v20 = vld [vmem:[%s2919_s5 + $0x116] sm:$0xff]  ;;  %v376_v8 = vld [vmem:[%s2919_s5 + $0x12c] sm:$0xff] }
 0x1fa   : > { %v3865_v32 = vpop.permute.xlu0 %535 }
 0x1fb   : > { %1339 = vrot.lane.b32.xlu1 %v407_v36, %s2835_s29 }
 0x1fc   : > { %1197 = vrot.lane.b32.xlu0 %v372_v39, %s2834_s20 }
 0x1fd   : > { %v1470_v14 = vpop.permute.xlu1 %1469 }
 0x1fe   : > { %v1074_v47 = vpop.permute.xlu0 %1073  ;;  %v1816_v29 = vsel %vm1794_vm8, %v1779_v45, %v1470_v14 }
 0x1ff   : > { %945 = vrot.lane.b32.xlu1 %v335_v21, %s2832_s9  ;;  %2633 = vmatmul.mubr.msk.f32.gmra.mrb[20].mxu0 %vm1843_vm9, %v1816_v29  ;;  %v1706_v23 = vsel %vm1683_vm5, %v1669_v44, %v1074_v47  ;;  %v265_v29 = vld [vmem:[%s2919_s5 + $0x111] sm:$0xff] }
 0x200   : > { %803 = vrot.lane.b32.xlu0 %v3875_v40, %s2831_s8 }
 0x201   : > { %v3885_v49 = vpop.permute.xlu1 %679 }
 0x202   : > { %v3887_v41 = vpop.permute.xlu0 %537 }
 0x203   : > { %1483 = vrot.lane.b32.xlu1 %v443_v4, %s2836_s12  ;;  %v446_v4 = vld [vmem:[%s2919_s5 + $0x11e] sm:$0xff] }
 0x204   : > { %1341 = vrot.lane.b32.xlu0 %v408_v48, %s2835_s29 }
 0x205   : > { %v1184_v50 = vpop.permute.xlu1 %1183 }
 0x206   : > { %v1076_v16 = vpop.permute.xlu0 %1075  ;;  %v1743_v24 = vsel %vm1720_vm6, %v1706_v23, %v1184_v50  ;;  %v338_v50 = vld [vmem:[%s2919_s5 + $0x11b] sm:$0xff] }
 0x207   : > { %1089 = vrot.lane.b32.xlu1 %v371_v9, %s2833_s10 }
 0x208   : > { %947 = vrot.lane.b32.xlu0 %v336_v63, %s2832_s9 }
 0x209   : > { %v3896_v60 = vpop.permute.xlu1 %789 }
 0x20a   : > { %v3898_v17 = vpop.permute.xlu0 %681 }
 0x20b   : > { %551 = vrot.lane.b32.xlu1 %v263_v35, %s2830_s7 }
 0x20c   : > { %1485 = vrot.lane.b32.xlu0 %v444_v43, %s2836_s12  ;;  %v219_v43 = vld [vmem:[%s2919_s5 + $0xc0] sm:$0xff] }
 0x20d   : > { %v1328_v3 = vpop.permute.xlu1 %1327  ;;  %v1560_v6 = vsel %vm1535_vm1, %v219_v43, %v3865_v32  ;;  %v378_v43 = vld [vmem:[%s2919_s5 + $0x13c] sm:$0xff] }
 0x20e   : > { %v1186_v51 = vpop.permute.xlu0 %1185  ;;  %v1780_v19 = vsel %vm1757_vm7, %v1743_v24, %v1328_v3  ;;  %v1597_v11 = vsel %vm1572_vm2, %v1560_v6, %v3885_v49  ;;  %v220_v49 = vld [vmem:[%s2919_s5 + $0xc8] sm:$0xff] }
 0x20f   : > { %1199 = vrot.lane.b32.xlu1 %v3904_v61, %s2834_s20 }
 0x210   : > { %1091 = vrot.lane.b32.xlu0 %v372_v39, %s2833_s10  ;;  %v1670_v39 = vsel %vm1646_vm4, %v1633_v15, %v3863_v62  ;;  %v337_v62 = vld [vmem:[%s2919_s5 + $0x113] sm:$0xff] }
 0x211   : > { %v3916_v9 = vpop.permute.xlu1 %933  ;;  %v1707_v22 = vsel %vm1683_vm5, %v1670_v39, %v1076_v16 }
 0x212   : > { %v3918_v18 = vpop.permute.xlu0 %791  ;;  %v2616_v54 = vpop.f32.mrb[8].mxu0  ;;  %v1744_v2 = vsel %vm1720_vm6, %v1707_v22, %v1186_v51  ;;  %v304_v22 = vld [vmem:[%s2919_s5 + $0x12a] sm:$0xff] }
 0x213   : > { %695 = vrot.lane.b32.xlu1 %v3844_v30, %s2829_s6  ;;  %v2068_v0 = vadd.f32 %v2616_v54, %v3605_v25  ;;  %v2062_v33 = vpop.f32.mrb[9].mxu0 }
 0x214   : > { %553 = vrot.lane.b32.xlu0 %v264_v56, %s2830_s7  ;;  %v2063_v26 = vadd.f32 %v3605_v25, %v2062_v33  ;;  %v375_v56 = vld [vmem:[%s2919_s5 + $0x124] sm:$0xff] }
 0x215   : > { %v1472_v46 = vpop.permute.xlu1 %1471  ;;  %v2210_v12 = vmax.f32 %v2068_v0, 0.0  ;;  %v303_v0 = vld [vmem:[%s2919_s5 + $0x122] sm:$0xff] }
 0x216   : > { %v1330_v5 = vpop.permute.xlu0 %1329  ;;  %v1817_v30 = vsel %vm1794_vm8, %v1780_v19, %v1472_v46  ;;  %v2209_v27 = vmax.f32 %v2063_v26, 0.0 }
 0x217   : > { %1343 = vrot.lane.b32.xlu1 %v409_v53, %s2835_s29  ;;  %2635 = vmatprep.mubr.msk.f32.mxu0 %vm1843_vm9, %v1817_v30  ;;  %v1781_v7 = vsel %vm1757_vm7, %v1744_v2, %v1330_v5  ;;  %v411_v30 = vld [vmem:[%s2919_s5 + $0x125] sm:$0xff] }
 0x218   : > { %1201 = vrot.lane.b32.xlu0 %v3931_v59, %s2834_s20  ;;  %v3947_v13 = vpack.c.bf16 %v2210_v12, %v2209_v27 }
 0x219   : > { %v3949_v38 = vpop.permute.xlu1 %935 }
 0x21a   : > { %v3951_v36 = vpop.permute.xlu0 %539 }
 0x21b   : > { %805 = vrot.lane.b32.xlu1 %v301_v10, %s2831_s8 }
 0x21c   : > { %697 = vrot.lane.b32.xlu0 %v3875_v40, %s2829_s6  ;;  %v302_v40 = vld [vmem:[%s2919_s5 + $0x11a] sm:$0xff] }
 0x21d   : > { %v1474_v37 = vpop.permute.xlu1 %1473 }
 0x21e   : > { %v1078_v21 = vpop.permute.xlu0 %1077  ;;  %v1818_v45 = vsel %vm1794_vm8, %v1781_v7, %v1474_v37  ;;  %v412_v37 = vld [vmem:[%s2919_s5 + $0x12d] sm:$0xff] }
 0x21f   : > { %1487 = vrot.lane.b32.xlu1 %v445_v20, %s2836_s12  ;;  %2636 = vmatmul.mubr.msk.f32.gmra.mrb[22].mxu0 %vm1843_vm9, %v1818_v45 }
 0x220   : > { %1345 = vrot.lane.b32.xlu0 %v410_v28, %s2835_s29 }
 0x221   : > { %v3969_v14 = vpop.permute.xlu1 %683 }
 0x222   : > { %v3971_v47 = vpop.permute.xlu0 %541 }
 0x223   : > { %949 = vrot.lane.b32.xlu1 %v337_v62, %s2832_s9  ;;  %v340_v62 = vld [vmem:[%s2919_s5 + $0x12b] sm:$0xff] }
 0x224   : > { %807 = vrot.lane.b32.xlu0 %v302_v40, %s2831_s8 }
 0x225   : > { %v1188_v48 = vpop.permute.xlu1 %1187 }
 0x226   : > { %v1080_v63 = vpop.permute.xlu0 %1079 }
 0x227   : > { %555 = vrot.lane.b32.xlu1 %v265_v29, %s2830_s7 }
 0x228   : > { %1489 = vrot.lane.b32.xlu0 %v446_v4, %s2836_s12  ;;  %v448_v4 = vld [vmem:[%s2919_s5 + $0x12e] sm:$0xff] }
 0x229   : > { %v3980_v16 = vpop.permute.xlu1 %793 }
 0x22a   : > { %v3982_v35 = vpop.permute.xlu0 %685 }
 0x22b   : > { %1093 = vrot.lane.b32.xlu1 %v3904_v61, %s2833_s10  ;;  %v1634_v61 = vsel %vm1609_vm3, %v1597_v11, %v3896_v60 }
 0x22c   : > { %951 = vrot.lane.b32.xlu0 %v338_v50, %s2832_s9  ;;  %v1671_v23 = vsel %vm1646_vm4, %v1634_v61, %v3916_v9  ;;  %v221_v50 = vld [vmem:[%s2919_s5 + $0xd0] sm:$0xff] }
 0x22d   : > { %v1332_v3 = vpop.permute.xlu1 %1331  ;;  %v1708_v32 = vsel %vm1683_vm5, %v1671_v23, %v1078_v21  ;;  %v1562_v6 = vsel %vm1535_vm1, %v221_v50, %v3951_v36  ;;  %v413_v61 = vld [vmem:[%s2919_s5 + $0x135] sm:$0xff] }
 0x22e   : > { %v1190_v51 = vpop.permute.xlu0 %1189  ;;  %v1745_v57 = vsel %vm1720_vm6, %v1708_v32, %v1188_v48  ;;  %v1599_v11 = vsel %vm1572_vm2, %v1562_v6, %v3969_v14  ;;  %v222_v14 = vld [vmem:[%s2919_s5 + $0xd8] sm:$0xff] }
 0x22f   : > { %699 = vrot.lane.b32.xlu1 %v301_v10, %s2829_s6  ;;  %v1782_v33 = vsel %vm1757_vm7, %v1745_v57, %v1332_v3  ;;  %v1636_v23 = vsel %vm1609_vm3, %v1599_v11, %v3980_v16  ;;  %v450_v16 = vld [vmem:[%s2919_s5 + $0x13e] sm:$0xff]  ;;  %v224_v11 = vld [vmem:[%s2919_s5 + $0xe8] sm:$0xff] }
 0x230   : > { %557 = vrot.lane.b32.xlu0 %v266_v55, %s2830_s7  ;;  %v377_v55 = vld [vmem:[%s2919_s5 + $0x134] sm:$0xff] }
 0x231   : > { %v3998_v1 = vpop.permute.xlu1 %937 }
 0x232   : > { %v4000_v44 = vpop.permute.xlu0 %795  ;;  %v2619_v54 = vpop.f32.mrb[10].mxu0  ;;  %v1673_v36 = vsel %vm1646_vm4, %v1636_v23, %v3998_v1 }
 0x233   : > { %1203 = vrot.lane.b32.xlu1 %v375_v56, %s2834_s20  ;;  %v2078_v60 = vadd.f32 %v2619_v54, %v3605_v25  ;;  %v2072_v24 = vpop.f32.mrb[11].mxu0 }
 0x234   : > { %1095 = vrot.lane.b32.xlu0 %v3931_v59, %s2833_s10  ;;  %v2073_v9 = vadd.f32 %v3605_v25, %v2072_v24  ;;  %v1561_v59 = vsel %vm1535_vm1, %v220_v49, %v3887_v41 }
 0x235   : > { %v1476_v53 = vpop.permute.xlu1 %1475  ;;  %v2212_v26 = vmax.f32 %v2078_v60, 0.0  ;;  %v1598_v12 = vsel %vm1572_vm2, %v1561_v59, %v3898_v17  ;;  %v1563_v59 = vsel %vm1535_vm1, %v222_v14, %v3971_v47 }
 0x236   : > { %v1334_v19 = vpop.permute.xlu0 %1333  ;;  %v1819_v46 = vsel %vm1794_vm8, %v1782_v33, %v1476_v53  ;;  %v2211_v5 = vmax.f32 %v2073_v9, 0.0  ;;  %v1635_v27 = vsel %vm1609_vm3, %v1598_v12, %v3918_v18  ;;  %v339_v18 = vld [vmem:[%s2919_s5 + $0x123] sm:$0xff]  ;;  %v449_v33 = vld [vmem:[%s2919_s5 + $0x136] sm:$0xff]  ;;  %v1600_v12 = vsel %vm1572_vm2, %v1563_v59, %v3982_v35 }
 0x237   : > { %809 = vrot.lane.b32.xlu1 %v303_v0, %s2831_s8  ;;  %2638 = vmatprep.mubr.msk.f32.mxu0 %vm1843_vm9, %v1819_v46  ;;  %v1672_v15 = vsel %vm1646_vm4, %v1635_v27, %v3949_v38  ;;  %v447_v38 = vld [vmem:[%s2919_s5 + $0x126] sm:$0xff] }
 0x238   : > { %701 = vrot.lane.b32.xlu0 %v302_v40, %s2829_s6  ;;  %v4026_v31 = vpack.c.bf16 %v2212_v26, %v2211_v5  ;;  %v1709_v17 = vsel %vm1683_vm5, %v1672_v15, %v1080_v63 }
 0x239   : > { %v4028_v41 = vpop.permute.xlu1 %939  ;;  %v1746_v39 = vsel %vm1720_vm6, %v1709_v17, %v1190_v51 }
 0x23a   : > { %v4030_v10 = vpop.permute.xlu0 %543  ;;  %v1783_v2 = vsel %vm1757_vm7, %v1746_v39, %v1334_v19 }
 0x23b   : > { %1347 = vrot.lane.b32.xlu1 %v411_v30, %s2835_s29  ;;  %v1637_v30 = vsel %vm1609_vm3, %v1600_v12, %v4000_v44 }
 0x23c   : > { %1205 = vrot.lane.b32.xlu0 %v376_v8, %s2834_s20  ;;  %v1674_v47 = vsel %vm1646_vm4, %v1637_v30, %v4028_v41 }
 0x23d   : > { %v1478_v20 = vpop.permute.xlu1 %1477 }
 0x23e   : > { %v1082_v28 = vpop.permute.xlu0 %1081  ;;  %v1820_v7 = vsel %vm1794_vm8, %v1783_v2, %v1478_v20 }
 0x23f   : > { %953 = vrot.lane.b32.xlu1 %v339_v18, %s2832_s9  ;;  %2639 = vmatmul.mubr.msk.f32.gmra.mrb[24].mxu0 %vm1843_vm9, %v1820_v7  ;;  %v1710_v49 = vsel %vm1683_vm5, %v1673_v36, %v1082_v28 }
 0x240   : > { %811 = vrot.lane.b32.xlu0 %v304_v22, %s2831_s8 }
 0x241   : > { %v4047_v21 = vpop.permute.xlu1 %687 }
 0x242   : > { %v4049_v45 = vpop.permute.xlu0 %545 }
 0x243   : > { %1491 = vrot.lane.b32.xlu1 %v447_v38, %s2836_s12 }
 0x244   : > { %1349 = vrot.lane.b32.xlu0 %v412_v37, %s2835_s29  ;;  %v223_v37 = vld [vmem:[%s2919_s5 + $0xe0] sm:$0xff] }
 0x245   : > { %v1192_v40 = vpop.permute.xlu1 %1191 }
 0x246   : > { %v1084_v29 = vpop.permute.xlu0 %1083  ;;  %v1747_v60 = vsel %vm1720_vm6, %v1710_v49, %v1192_v40 }
 0x247   : > { %1097 = vrot.lane.b32.xlu1 %v375_v56, %s2833_s10  ;;  %v414_v56 = vld [vmem:[%s2919_s5 + $0x13d] sm:$0xff]  ;;  %v1711_v17 = vsel %vm1683_vm5, %v1674_v47, %v1084_v29  ;;  %v1564_v29 = vsel %vm1535_vm1, %v223_v37, %v4030_v10 }
 0x248   : > { %955 = vrot.lane.b32.xlu0 %v340_v62, %s2832_s9  ;;  %s188_s9 = sand.u32 1, %s2819_s16  }
 0x249   : > { %v4057_v48 = vpop.permute.xlu1 %797 }
 0x24a   : > { %v4059_v63 = vpop.permute.xlu0 %689 }
 0x24b   : > { %1099 = vrot.lane.b32.xlu1 %v376_v8, %s2833_s10  ;;  %s2508_s10 = sshll.u32 %s2887_s19, 4  ;;  %s2840_s19 = smov [#allocation2]  }
 0x24c   : > { %1493 = vrot.lane.b32.xlu0 %v448_v4, %s2836_s12  ;;  %v1601_v4 = vsel %vm1572_vm2, %v1564_v29, %v4047_v21  ;;  %v4162_v29 = vld [vmem:[%s4294_s2] ss:$0 sm:$0xff]  ;;  %s4250_s28 = scalar_lea.hbm %s4296_s4, %s2508_s10  ;;  %s2769_s11 = sshll.u32 %s2840_s19, 4  ;;  %s2770_s11 = int_to_ptr.vmem [resolvable:$false] %s2769_s11 }
 0x24d   : > { %v1336_v3 = vpop.permute.xlu1 %1335  ;;  %v1638_v50 = vsel %vm1609_vm3, %v1601_v4, %v4057_v48 }
 0x24e   : > { %v1194_v51 = vpop.permute.xlu0 %1193  ;;  %v1784_v9 = vsel %vm1757_vm7, %v1747_v60, %v1336_v3 }
 0x24f   : > { %1209 = vrot.lane.b32.xlu1 %v378_v43, %s2834_s20  ;;  %v1748_v39 = vsel %vm1720_vm6, %v1711_v17, %v1194_v51 }
 0x250   : > { %1207 = vrot.lane.b32.xlu0 %v377_v55, %s2834_s20  ;;  %s189_s20 = scalar_lea.vmem [#allocation2], %s188_s9 }
 0x251   : > { %v942_v32 = vpop.permute.xlu1 %941  ;;  %s2409_s22 = sshll.u32 %s189_s20, 4  ;;  %s4252_s22 = int_to_ptr.vmem [resolvable:$true] %s2409_s22 }
 0x252   : > { %v4076_v54 = vpop.permute.xlu0 %799  ;;  %v2622_v57 = vpop.f32.mrb[12].mxu0  ;;  %v1675_v3 = vsel %vm1646_vm4, %v1638_v50, %v942_v32  ;;  %v1565_v32 = vsel %vm1535_vm1, %v224_v11, %v4049_v45  ;;  %s2765_s30 = scalar_lea.vmem %s4252_s22, 16  ;;  %p2772_p0 = scmp.lt.s32.totalorder %s4252_s22, %s2770_s11 }
 0x253   : > { %1353 = vrot.lane.b32.xlu1 %v414_v56, %s2835_s29  ;;  %v2088_v24 = vadd.f32 %v2622_v57, %v3605_v25  ;;  %v2082_v0 = vpop.f32.mrb[13].mxu0  ;;  %v1602_v60 = vsel %vm1572_vm2, %v1565_v32, %v4059_v63  ;;  %p2766_p11 = scmp.ne.s32.totalorder %s4252_s22, %s2765_s30 }
 0x254   : > { %1351 = vrot.lane.b32.xlu0 %v413_v61, %s2835_s29  ;;  %v2083_v53 = vadd.f32 %v3605_v25, %v2082_v0  ;;  %s2397_s29 = scalar_lea.sflag [#allocation3], %s188_s9 }
 0x255   : > { %v1480_v1 = vpop.permute.xlu1 %1479  ;;  %v2214_v26 = vmax.f32 %v2088_v24, 0.0  ;;  %v1639_v24 = vsel %vm1609_vm3, %v1602_v60, %v4076_v54  ;;  %p2767_p12 = pnand %p2766_p11, %p2904_p5 }
 0x256   : > { %v1338_v19 = vpop.permute.xlu0 %1337  ;;  %v1821_v46 = vsel %vm1794_vm8, %v1784_v9, %v1480_v1  ;;  %v2213_v5 = vmax.f32 %v2083_v53, 0.0 }
 0x257   : > { %1497 = vrot.lane.b32.xlu1 %v450_v16, %s2836_s12  ;;  %2641 = vmatprep.mubr.msk.f32.mxu0 %vm1843_vm9, %v1821_v46  ;;  %v1785_v18 = vsel %vm1757_vm7, %v1748_v39, %v1338_v19  ;;  %p2768_p13 = pneg %p2767_p12 }
 0x258   : > { %1495 = vrot.lane.b32.xlu0 %v449_v33, %s2836_s12  ;;  %v4100_v8 = vpack.c.bf16 %v2214_v26, %v2213_v5  ;;  %v225_v5 = vld [vmem:[%s2919_s5 + $0xf0] sm:$0xff]  ;;  %s2771_s12 = scalar_lea.vmem %s2770_s11, 32 }
 0x259   : > { %v944_v27 = vpop.permute.xlu1 %943  ;;  %p2773_p1 = scmp.lt.s32.totalorder %s2771_s12, %s2765_s30 }
 0x25a   : > { %v548_v15 = vpop.permute.xlu0 %547  ;;  %v1676_v33 = vsel %vm1646_vm4, %v1639_v24, %v944_v27 }
 0x25b   : > { %v1566_v27 = vsel %vm1535_vm1, %v225_v5, %v548_v15  ;;  %p2774_p2 = por %p2773_p1, %p2772_p0 }
 0x25d   : > { %v1482_v35 = vpop.permute.xlu1 %1481  ;;  %p2775_p3 = pnand %p2774_p2, %p2768_p13 }
 0x25e   : > { %v1086_v22 = vpop.permute.xlu0 %1085  ;;  %v1822_v2 = vsel %vm1794_vm8, %v1785_v18, %v1482_v35 }
 0x25f   : > { %2642 = vmatmul.mubr.msk.f32.gmra.mrb[26].mxu0 %vm1843_vm9, %v1822_v2  ;;  %v1712_v51 = vsel %vm1683_vm5, %v1675_v3, %v1086_v22  ;;  %v226_v2 = vld [vmem:[%s2919_s5 + $0xf8] sm:$0xff] }
 0x261   : > { %v692_v44 = vpop.permute.xlu1 %691 }
 0x262   : > { %v4109_v20 = vpop.permute.xlu0 %549  ;;  %v1603_v47 = vsel %vm1572_vm2, %v1566_v27, %v692_v44 }
 0x263   : > { %v1567_v44 = vsel %vm1535_vm1, %v226_v2, %v4109_v20 }
 0x265   : > { %v1196_v28 = vpop.permute.xlu1 %1195 }
 0x266   : > { %v1088_v7 = vpop.permute.xlu0 %1087  ;;  %v1749_v56 = vsel %vm1720_vm6, %v1712_v51, %v1196_v28 }
 0x267   : > { %v1713_v9 = vsel %vm1683_vm5, %v1676_v33, %v1088_v7 }
 0x269   : > { %v802_v38 = vpop.permute.xlu1 %801 }
 0x26a   : > { %v694_v41 = vpop.permute.xlu0 %693  ;;  %v1640_v17 = vsel %vm1609_vm3, %v1603_v47, %v802_v38 }
 0x26d   : > { %v1340_v62 = vpop.permute.xlu1 %1339 }
 0x26e   : > { %v1198_v40 = vpop.permute.xlu0 %1197  ;;  %v1786_v10 = vsel %vm1757_vm7, %v1749_v56, %v1340_v62 }
 0x26f   : > { %v1750_v45 = vsel %vm1720_vm6, %v1713_v9, %v1198_v40  ;;  %v1604_v40 = vsel %vm1572_vm2, %v1567_v44, %v694_v41 }
 0x271   : > { %v946_v43 = vpop.permute.xlu1 %945 }
 0x272   : > { %v804_v55 = vpop.permute.xlu0 %803  ;;  %v2625_v6 = vpop.f32.mrb[14].mxu0  ;;  %v1677_v35 = vsel %vm1646_vm4, %v1640_v17, %v946_v43 }
 0x273   : > { %v2098_v61 = vadd.f32 %v2625_v6, %v3605_v25  ;;  %v2092_v23 = vpop.f32.mrb[15].mxu0  ;;  %v1641_v43 = vsel %vm1609_vm3, %v1604_v40, %v804_v55 }
 0x274   : > { %v2093_v21 = vadd.f32 %v3605_v25, %v2092_v23 }
 0x275   : > { %v1484_v36 = vpop.permute.xlu1 %1483  ;;  %v2216_v48 = vmax.f32 %v2098_v61, 0.0 }
 0x276   : > { %v1342_v49 = vpop.permute.xlu0 %1341  ;;  %v1823_v57 = vsel %vm1794_vm8, %v1786_v10, %v1484_v36  ;;  %v2215_v14 = vmax.f32 %v2093_v21, 0.0 }
 0x277   : > { %2644 = vmatprep.mubr.msk.f32.mxu0 %vm1843_vm9, %v1823_v57  ;;  %v1787_v53 = vsel %vm1757_vm7, %v1750_v45, %v1342_v49 }
 0x278   : > { %v4133_v0 = vpack.c.bf16 %v2216_v48, %v2215_v14 }
 0x279   : > { %v1090_v25 = vpop.permute.xlu1 %1089 }
 0x27a   : > { %v948_v16 = vpop.permute.xlu0 %947  ;;  %v1714_v22 = vsel %vm1683_vm5, %v1677_v35, %v1090_v25 }
 0x27b   : > { %v1678_v20 = vsel %vm1646_vm4, %v1641_v43, %v948_v16  ;;  %v227_v16 = vld [vmem:[%s2919_s5 + $0x100] sm:$0xff] }
 0x27d   : > { %v552_v1 = vpop.permute.xlu1 %551 }
 0x27e   : > { %v1486_v19 = vpop.permute.xlu0 %1485  ;;  %v1568_v45 = vsel %vm1535_vm1, %v227_v16, %v552_v1 }
 0x27f   : > { %v1824_v63 = vsel %vm1794_vm8, %v1787_v53, %v1486_v19 }
 0x280   : > { %2645 = vmatmul.mubr.msk.f32.gmra.mrb[28].mxu0 %vm1843_vm9, %v1824_v63 }
 0x281   : > { %v1200_v54 = vpop.permute.xlu1 %1199 }
 0x282   : > { %v1092_v26 = vpop.permute.xlu0 %1091  ;;  %v1751_v28 = vsel %vm1720_vm6, %v1714_v22, %v1200_v54 }
 0x283   : > { %v1715_v56 = vsel %vm1683_vm5, %v1678_v20, %v1092_v26 }
 0x285   : > { %v696_v46 = vpop.permute.xlu1 %695 }
 0x286   : > { %v4141_v59 = vpop.permute.xlu0 %553  ;;  %v1605_v53 = vsel %vm1572_vm2, %v1568_v45, %v696_v46 }
 0x289   : > { %v1344_v12 = vpop.permute.xlu1 %1343 }
 0x28a   : > { %v1202_v30 = vpop.permute.xlu0 %1201  ;;  %v1788_v7 = vsel %vm1757_vm7, %v1751_v28, %v1344_v12  ;;  %v228_v12 = vld [vmem:[%s2919_s5 + $0x108] sm:$0xff] }
 0x28b   : > { %v1752_v61 = vsel %vm1720_vm6, %v1715_v56, %v1202_v30  ;;  %v1569_v2 = vsel %vm1535_vm1, %v228_v12, %v4141_v59 }
 0x28d   : > { %v806_v39 = vpop.permute.xlu1 %805 }
 0x28e   : > { %v4147_v18 = vpop.permute.xlu0 %697  ;;  %v1642_v19 = vsel %vm1609_vm3, %v1605_v53, %v806_v39 }
 0x291   : > { %v1488_v37 = vpop.permute.xlu1 %1487 }
 0x292   : > { %v1346_v62 = vpop.permute.xlu0 %1345  ;;  %v1825_v15 = vsel %vm1794_vm8, %v1788_v7, %v1488_v37  ;;  %v2628_v38 = vpop.f32.mrb[16].mxu0  ;;  %v1606_v7 = vsel %vm1572_vm2, %v1569_v2, %v4147_v18 }
 0x293   : > { %2647 = vmatprep.mubr.msk.f32.mxu0 %vm1843_vm9, %v1825_v15  ;;  %v2108_v4 = vadd.f32 %v4162_v29, %v2628_v38  ;;  %v2102_v50 = vpop.f32.mrb[17].mxu0  ;;  %v1789_v23 = vsel %vm1757_vm7, %v1752_v61, %v1346_v62 }
 0x294   : > { %v2103_v3 = vadd.f32 %v4162_v29, %v2102_v50 }
 0x295   : > { %v950_v51 = vpop.permute.xlu1 %949  ;;  %v2218_v11 = vmax.f32 %v2108_v4, 0.0 }
 0x296   : > { %v808_v6 = vpop.permute.xlu0 %807  ;;  %v2217_v41 = vmax.f32 %v2103_v3, 0.0  ;;  %v1679_v54 = vsel %vm1646_vm4, %v1642_v19, %v950_v51  ;;  %v229_v3 = vld [vmem:[%s2919_s5 + $0x110] sm:$0xff]  ;;  %v230_v51 = vld [vmem:[%s2919_s5 + $0x118] sm:$0xff] }
 0x297   : > { %v1643_v37 = vsel %vm1609_vm3, %v1606_v7, %v808_v6 }
 0x298   : > { %v2675_v36 = vpack.c.bf16 %v2218_v11, %v2217_v41 }
 0x299   : > { %v556_v10 = vpop.permute.xlu1 %555 }
 0x29a   : > { %v1490_v21 = vpop.permute.xlu0 %1489  ;;  %2676 = vmatprep.subr.bf16.mxu1 %v2675_v36  ;;  %v1570_v11 = vsel %vm1535_vm1, %v229_v3, %v556_v10 }
 0x29b   : > { %v1826_v55 = vsel %vm1794_vm8, %v1789_v23, %v1490_v21  ;;  %2678 = vmatpush3.bf16.msra.mxu1 %v3634_v58 }
 0x29c   : > { %2648 = vmatmul.mubr.msk.f32.gmra.mrb[30].mxu0 %vm1843_vm9, %v1826_v55 }
 0x29d   : > { %v1094_v49 = vpop.permute.xlu1 %1093 }
 0x29e   : > { %v952_v48 = vpop.permute.xlu0 %951  ;;  %v1716_v26 = vsel %vm1683_vm5, %v1679_v54, %v1094_v49 }
 0x29f   : > { %v1680_v38 = vsel %vm1646_vm4, %v1643_v37, %v952_v48  ;;  %v2237_v37 = vld [vmem:[%s4295_s3] sm:$0x7] }
 0x2a1   : > { %v700_v57 = vpop.permute.xlu1 %699 }
 0x2a2   : > { %v558_v32 = vpop.permute.xlu0 %557  ;;  %v1607_v41 = vsel %vm1572_vm2, %v1570_v11, %v700_v57 }
 0x2a3   : > { %v1571_v56 = vsel %vm1535_vm1, %v230_v51, %v558_v32 }
 0x2a5   : > { %v1204_v14 = vpop.permute.xlu1 %1203 }
 0x2a6   : > { %v1096_v60 = vpop.permute.xlu0 %1095  ;;  %v1753_v30 = vsel %vm1720_vm6, %v1716_v26, %v1204_v14 }
 0x2a7   : > { %v1717_v40 = vsel %vm1683_vm5, %v1680_v38, %v1096_v60 }
 0x2a9   : > { %v810_v24 = vpop.permute.xlu1 %809 }
 0x2aa   : > { %v702_v25 = vpop.permute.xlu0 %701  ;;  %v1644_v61 = vsel %vm1609_vm3, %v1607_v41, %v810_v24 }
 0x2ad   : > { %v1348_v33 = vpop.permute.xlu1 %1347 }
 0x2ae   : > { %v1206_v9 = vpop.permute.xlu0 %1205  ;;  %v1790_v17 = vsel %vm1757_vm7, %v1753_v30, %v1348_v33 }
 0x2af   : > { %v1754_v59 = vsel %vm1720_vm6, %v1717_v40, %v1206_v9 }
 0x2b1   : > { %v954_v63 = vpop.permute.xlu1 %953 }
 0x2b2   : > { %v812_v58 = vpop.permute.xlu0 %811  ;;  %v2631_v5 = vpop.f32.mrb[18].mxu0  ;;  %v1681_v55 = vsel %vm1646_vm4, %v1644_v61, %v954_v63 }
 0x2b3   : > { %v2118_v27 = vadd.f32 %v4162_v29, %v2631_v5  ;;  %v2112_v47 = vpop.f32.mrb[19].mxu0 }
 0x2b4   : > { %v2113_v1 = vadd.f32 %v4162_v29, %v2112_v47 }
 0x2b5   : > { %v1492_v46 = vpop.permute.xlu1 %1491  ;;  %v2220_v39 = vmax.f32 %v2118_v27, 0.0 }
 0x2b6   : > { %v1350_v35 = vpop.permute.xlu0 %1349  ;;  %v1827_v22 = vsel %vm1794_vm8, %v1790_v17, %v1492_v46  ;;  %v2219_v28 = vmax.f32 %v2113_v1, 0.0  ;;  %v2239_v1 = vlaneseq }
 0x2b7   : > { %2650 = vmatprep.mubr.msk.f32.mxu0 %vm1843_vm9, %v1827_v22  ;;  %v1791_v4 = vsel %vm1757_vm7, %v1754_v59, %v1350_v35 }
 0x2b8   : > { %v2679_v62 = vpack.c.bf16 %v2220_v39, %v2219_v28  ;;  %v2240_v22 = vshrl.u32 %v2239_v1, 7 }
 0x2b9   : > { %v1098_v15 = vpop.permute.xlu1 %1097 }
 0x2ba   : > { %v956_v44 = vpop.permute.xlu0 %955  ;;  %2680 = vmatprep.subr.bf16.mxu1 %v2679_v62  ;;  %v1718_v48 = vsel %vm1683_vm5, %v1681_v55, %v1098_v15  ;;  %v2245_v28 = vsub.s32 1, %v2240_v22  ;;  %v2241_v62 = vsub.s32 0, %v2240_v22 }
 0x2bb   : > { %2682 = vmatpush3.bf16.msra.mxu1 %v3706_v52  ;;  %v1608_v52 = vsel %vm1572_vm2, %v1571_v56, %v702_v25 }
 0x2bc   : > { %v1645_v23 = vsel %vm1609_vm3, %v1608_v52, %v812_v58  ;;  %v2246_v15 = vrot.slane %v2237_v37, %v2245_v28 }
 0x2bd   : > { %v1100_v50 = vpop.permute.xlu1 %1099  ;;  %v1682_v49 = vsel %vm1646_vm4, %v1645_v23, %v956_v44  ;;  %v2249_v44 = vsub.s32 2, %v2240_v22 }
 0x2be   : > { %v1494_v43 = vpop.permute.xlu0 %1493  ;;  %v1719_v10 = vsel %vm1683_vm5, %v1682_v49, %v1100_v50  ;;  %2319 = vmatprep.mubr.f32.mxu1 %v2246_v15 }
 0x2bf   : > { %v1828_v18 = vsel %vm1794_vm8, %v1791_v4, %v1494_v43  ;;  %v2250_v40 = vrot.slane %v2237_v37, %v2249_v44 }
 0x2c0   : > { %2651 = vmatmul.mubr.msk.f32.gmra.mrb[32].mxu0 %vm1843_vm9, %v1828_v18 }
 0x2c1   : > { %v1210_v6 = vpop.permute.xlu1 %1209 }
 0x2c2   : > { %v1208_v20 = vpop.permute.xlu0 %1207  ;;  %v1756_v32 = vsel %vm1720_vm6, %v1719_v10, %v1210_v6  ;;  %v2839_v10 = vmov 0.0  }
 0x2c3   : > { %v1755_v57 = vsel %vm1720_vm6, %v1718_v48, %v1208_v20  ;;  %v2837_v48 = vmov 0.0|0.0  }
 0x2c5   : > { %v1354_v21 = vpop.permute.xlu1 %1353 }
 0x2c6   : > { %v1352_v36 = vpop.permute.xlu0 %1351  ;;  %v1793_v14 = vsel %vm1757_vm7, %v1756_v32, %v1354_v21 }
 0x2c7   : > { %v1792_v60 = vsel %vm1757_vm7, %v1755_v57, %v1352_v36 }
 0x2c9   : > { %v1498_v24 = vpop.permute.xlu1 %1497 }
 0x2ca   : > { %v1496_v25 = vpop.permute.xlu0 %1495  ;;  %v1830_v16 = vsel %vm1794_vm8, %v1793_v14, %v1498_v24 }
 0x2cb   : > { %v1829_v33 = vsel %vm1794_vm8, %v1792_v60, %v1496_v25 }
 0x2cc   : > { %2653 = vmatprep.mubr.msk.f32.mxu0 %vm1843_vm9, %v1829_v33 }
 0x2cd   : > { %2654 = vmatmul.mubr.msk.f32.gmra.mrb[34].mxu0 %vm1843_vm9, %v1830_v16 }
 0x2d2   : > { %v2634_v9 = vpop.f32.mrb[20].mxu0 }
 0x2d3   : > { %v2128_v45 = vadd.f32 %v4162_v29, %v2634_v9  ;;  %v2122_v53 = vpop.f32.mrb[21].mxu0 }
 0x2d4   : > { %v2123_v19 = vadd.f32 %v4162_v29, %v2122_v53 }
 0x2d5   : > { %v2222_v63 = vmax.f32 %v2128_v45, 0.0 }
 0x2d6   : > { %v2221_v58 = vmax.f32 %v2123_v19, 0.0 }
 0x2d8   : > { %v2683_v54 = vpack.c.bf16 %v2222_v63, %v2221_v58 }
 0x2da   : > { %2684 = vmatprep.subr.bf16.mxu1 %v2683_v54 }
 0x2db   : > { %2686 = vmatpush3.bf16.msra.mxu1 %v3782_v42 }
 0x2f2   : > { %v2637_v26 = vpop.f32.mrb[22].mxu0 }
 0x2f3   : > { %v2138_v5 = vadd.f32 %v4162_v29, %v2637_v26  ;;  %v2132_v12 = vpop.f32.mrb[23].mxu0 }
 0x2f4   : > { %v2133_v30 = vadd.f32 %v4162_v29, %v2132_v12 }
 0x2f5   : > { %v2224_v27 = vmax.f32 %v2138_v5, 0.0 }
 0x2f6   : > { %v2223_v47 = vmax.f32 %v2133_v30, 0.0 }
 0x2f8   : > { %v2687_v17 = vpack.c.bf16 %v2224_v27, %v2223_v47 }
 0x2fa   : > { %2688 = vmatprep.subr.bf16.mxu1 %v2687_v17 }
 0x2fb   : > { %2690 = vmatpush3.bf16.msra.mxu1 %v3861_v34  ;;  %v2242_v34 = vrot.slane %v2237_v37, %v2241_v62 }
 0x312   : > { %v2640_v46 = vpop.f32.mrb[24].mxu0 }
 0x313   : > { %v2148_v35 = vadd.f32 %v4162_v29, %v2640_v46  ;;  %v2142_v39 = vpop.f32.mrb[25].mxu0 }
 0x314   : > { %v2143_v42 = vadd.f32 %v4162_v29, %v2142_v39 }
 0x315   : > { %v2226_v2 = vmax.f32 %v2148_v35, 0.0 }
 0x316   : > { %v2225_v7 = vmax.f32 %v2143_v42, 0.0 }
 0x318   : > { %v2691_v38 = vpack.c.bf16 %v2226_v2, %v2225_v7 }
 0x31a   : > { %2692 = vmatprep.subr.bf16.mxu1 %v2691_v38 }
 0x31b   : > { %2694 = vmatpush3.bf16.msra.mxu1 %v3947_v13 }
 0x332   : > { %v2643_v59 = vpop.f32.mrb[26].mxu0 }
 0x333   : > { %v2158_v4 = vadd.f32 %v4162_v29, %v2643_v59  ;;  %v2152_v50 = vpop.f32.mrb[27].mxu0 }
 0x334   : > { %v2153_v43 = vadd.f32 %v4162_v29, %v2152_v50 }
 0x335   : > { %v2228_v18 = vmax.f32 %v2158_v4, 0.0 }
 0x336   : > { %v2227_v3 = vmax.f32 %v2153_v43, 0.0 }
 0x338   : > { %v2695_v51 = vpack.c.bf16 %v2228_v18, %v2227_v3 }
 0x33a   : > { %2696 = vmatprep.subr.bf16.mxu1 %v2695_v51 }
 0x33b   : > { %2698 = vmatpush3.bf16.msra.mxu1 %v4026_v31 }
 0x353   : > { %v2646_v6 = vpop.f32.mrb[28].mxu0 }
 0x354   : > { %v2168_v20 = vadd.f32 %v4162_v29, %v2646_v6  ;;  %v2162_v11 = vpop.f32.mrb[29].mxu0 }
 0x355   : > { %v2163_v56 = vadd.f32 %v4162_v29, %v2162_v11 }
 0x356   : > { %v2230_v41 = vmax.f32 %v2168_v20, 0.0 }
 0x357   : > { %v2229_v13 = vmax.f32 %v2163_v56, 0.0 }
 0x359   : > { %v2699_v52 = vpack.c.bf16 %v2230_v41, %v2229_v13 }
 0x35b   : > { %2700 = vmatprep.subr.bf16.mxu1 %v2699_v52 }
 0x35c   : > { %2702 = vmatpush3.bf16.msra.mxu1 %v4100_v8 }
 0x36f   : > { %v2649_v61 = vpop.f32.mrb[30].mxu0 }
 0x370   : > { %v2178_v23 = vadd.f32 %v4162_v29, %v2649_v61  ;;  %v2172_v21 = vpop.f32.mrb[31].mxu0 }
 0x371   : > { %v2173_v36 = vadd.f32 %v4162_v29, %v2172_v21 }
 0x372   : > { %v2232_v55 = vmax.f32 %v2178_v23, 0.0 }
 0x373   : > { %v2231_v31 = vmax.f32 %v2173_v36, 0.0 }
 0x375   : > { %v2703_v49 = vpack.c.bf16 %v2232_v55, %v2231_v31 }
 0x377   : > { %2704 = vmatprep.subr.bf16.mxu1 %v2703_v49 }
 0x378   : > { %2706 = vmatpush3.bf16.msra.mxu1 %v4133_v0 }
 0x379   : > { %2707 = vmatprep.subr.bf16.mxu1 %v2837_v48 }
 0x37b   : > { %2320 = vmatmul.mubr.f32.vlgmr.msra.gmra.mrb[0].mxu1 %v2242_v34 }
 0x37c   : > { %2664 = vmatprep.mubr.msk.f32.mxu1 %vm2838_vm10, %v2839_v10 }
 0x393   : > { %v2652_v32 = vpop.f32.mrb[32].mxu0 }
 0x394   : > { %v2188_v8 = vadd.f32 %v4162_v29, %v2652_v32  ;;  %v2182_v57 = vpop.f32.mrb[33].mxu0 }
 0x395   : > { %v2183_v14 = vadd.f32 %v4162_v29, %v2182_v57 }
 0x396   : > { %v2234_v60 = vmax.f32 %v2188_v8, 0.0 }
 0x397   : > { %v2233_v24 = vmax.f32 %v2183_v14, 0.0 }
 0x399   : > { %v2708_v25 = vpack.c.bf16 %v2234_v60, %v2233_v24 }
 0x39b   : > { %2709 = vmatpush3.bf16.msra.mxu1 %v2708_v25 }
 0x39c   : > { %2710 = vmatprep.subr.bf16.mxu1 %v2837_v48 }
 0x3a0   : > { %v2655_v0 = vpop.f32.mrb[34].mxu0 }
 0x3a1   : > { %v2198_v16 = vadd.f32 %v4162_v29, %v2655_v0  ;;  %v2192_v33 = vpop.f32.mrb[35].mxu0 }
 0x3a2   : > { %v2193_v9 = vadd.f32 %v4162_v29, %v2192_v33 }
 0x3a3   : > { %v2236_v45 = vmax.f32 %v2198_v16, 0.0 }
 0x3a4   : > { %v2235_v53 = vmax.f32 %v2193_v9, 0.0 }
 0x3a6   : > { %v2711_v19 = vpack.c.bf16 %v2236_v45, %v2235_v53 }
 0x3a8   : > { %2712 = vmatpush3.bf16.msra.mxu1 %v2711_v19 }
 0x3ab   : > { %2665 = vmatmul.mubr.msk.f32.vlgmr.msra.gmra.mrb[2].mxu1 %vm1794_vm8, %v2250_v40 }
 0x44e   : > { %v2584_v63 = vpop.f32.mrb[0].mxu1 }
 0x44f   : > { %v2585_v58 = vpop.f32.mrb[1].mxu1 }
 0x450   : > { %v2586_v54 = vadd.f32 %v2585_v58, %v2584_v63 }
 0x47e   : > { %v2391_v26 = vpop.f32.mrb[2].mxu1 }
 0x47f   : > { %v2392_v5 = vadd.f32 %v2586_v54, %v2391_v26  ;;  %v2666_v12 = vpop.f32.mrb[3].mxu1 }
 0x481   : > { %2395 = vst [vmem:[%s189_s20] sm:$0x1] %v2392_v5 }
 0x482   : > { %2778 = shalt.err (!%p2775_p3)
}
 0x483   : > { %s2779_s13 = scalar_lea.hbm %s4250_s28, 16  ;;  %s2783_s7 = scalar_lea.hbm %s4296_s4, 32 }
 0x484   : > { %p2780_p4 = scmp.ne.s32.totalorder %s4250_s28, %s2779_s13  ;;  %p2784_p9 = scmp.lt.u32.totalorder %s4250_s28, %s4296_s4 }
 0x485   : > { %p2785_p10 = scmp.lt.u32.totalorder %s2783_s7, %s2779_s13  ;;  %p2787_p12 = scmp.lt.u32.totalorder %s2779_s13, %s4250_s28 }
 0x486   : > { %p2781_p7 = pnand %p2780_p4, %p2904_p5 }
 0x487   : > { %p2786_p11 = por %p2785_p10, %p2784_p9 }
 0x488   : > { %p2782_p8 = pneg %p2781_p7 }
 0x489   : > { %p2788_p13 = por %p2787_p12, %p2786_p11 }
 0x48b   : > { %p2789_p0 = pnand %p2788_p13, %p2782_p8 }
 0x48d   : > { %2792 = shalt.err (!%p2789_p0)
}
 0x48e   : > { %2714 = dma.vmem_to_hbm [thread:$0]  (%p2904_p5), %s4252_s22, 16, %s4250_s28, %s2397_s29  }
 0x48f PF: > { %p2720_p1 = scmp.ge.s32.totalorder %s2827_s18, 2  ;;  %s2421_s9 = sand.u32 1, %s2815_s15  }
 0x490   : > { %s2422_s10 = scalar_lea.sflag [#allocation3], %s2421_s9 }
 0x491   : > { %p2717_p2 = pnand %p2720_p1, %p2908_p6 }
 0x493   : > { %2810 = dma.done.wait (!%p2717_p2), %s2422_s10, 16  }
 0x494   : > { %2812 = vsyncadd (!%p2717_p2), %s2422_s10, 4294967280  ;;  %p14_p3 = scmp.ge.s32.totalorder %s2891_s21, 4   ;;  %s4299_s15 = smov %s2819_s16 }
 0x495   : > { %s4300_s16 = smov %s2823_s17  ;;  %s4301_s17 = smov %s2902_s24 }
 0x496   : > { %s4302_s18 = smov %s2891_s21  ;;  %16 = sbr.rel (!%p14_p3) target bundleno = 3 (0x3), region = 71 }
 0x49d   :  { %2426 = vsyncpa [#allocation3], 1 }
 0x49e   :  { %2428 = vsyncpa [#allocation3 + $0x1], 1 }

</bundles_post_ra>
